<compile_context>
chip_gen: v7x
topology: tpu7x:2x2x1
jax: 0.10.0
libtpu: 0.0.40
codegen_flags: <defaults>
</compile_context>

<pallas_src>
import functools

import numpy as np
import jax
import jax.numpy as jnp
from jax.experimental import pallas as pl
from jax.experimental.pallas import tpu as pltpu


# ------------------------------ helpers --------------------------------------

def _full_spec(shape):
    """BlockSpec covering the whole array (block == full array dims, rule-compliant)."""
    n = len(shape)
    return pl.BlockSpec(shape, lambda i: (0,) * n)


def _layer_norm(y, gamma, beta, eps):
    mu = jnp.mean(y, axis=-1, keepdims=True)
    yc = y - mu
    var = jnp.mean(yc * yc, axis=-1, keepdims=True)
    return yc * jax.lax.rsqrt(var + eps) * gamma + beta


# ------------------------------ fused forward kernel -------------------------

def _fused_kernel(emb_ref, mask_ref, convw_ref, convb_ref,
                  wv_ref, bv_ref, wo_ref, bo_ref,
                  ln1g_ref, ln1b_ref, w1_ref, b1_ref, w2_ref, b2_ref,
                  ln2g_ref, ln2b_ref, fcw_ref, fcb_ref, o_ref,
                  *, batch, seq_len, max_fs, eps):
    BS = batch * seq_len
    D = convb_ref.shape[1]                                  # 128 lanes

    # ---- FSM / TextCNN ------------------------------------------------------
    # One lane-dense MXU matmul computes every tap of every filter at every position:
    # columns [j*D + f*C : j*D + (f+1)*C] = tap j of filter f (zero if filter has no tap j).
    taps = jnp.dot(emb_ref[...], convw_ref[...],
                   preferred_element_type=jnp.float32)      # (B*S, max_fs*D) f32

    acc = taps[:, 0:D]
    for j in range(1, max_fs):
        # conv output at position t needs tap j evaluated at position t+j: rotate the
        # 128-lane-aligned tap-j slab up by j rows (XLU sublane rotate).  Rows that wrap
        # or cross a sequence boundary land on positions zeroed by the pool mask below,
        # and filters without tap j have all-zero weight columns, so no contamination.
        acc = acc + pltpu.roll(taps[:, j * D:(j + 1) * D], shift=BS - j, axis=0)

    acc = jnp.maximum(acc + convb_ref[...], 0.0)            # Conv2d bias + ReLU
    acc = acc * mask_ref[...]                               # zero invalid conv positions
    pooled = jnp.max(acc.reshape(batch, seq_len, D), axis=1)  # max_pool1d over length -> (B,D)

    # ---- encoder layer (post-norm nn.TransformerEncoderLayer, eval mode) ----
    # Token axis has length 1 -> softmax over the single key is exactly 1 -> context == V.
    # q/k projections and the softmax are mathematically dead and are dropped.
    x = pooled
    v = jnp.dot(x.astype(jnp.bfloat16), wv_ref[...],
                preferred_element_type=jnp.float32) + bv_ref[...]
    attn = jnp.dot(v.astype(jnp.bfloat16), wo_ref[...],
                   preferred_element_type=jnp.float32) + bo_ref[...]
    h1 = _layer_norm(x + attn, ln1g_ref[...], ln1b_ref[...], eps)

    ff = jnp.dot(h1.astype(jnp.bfloat16), w1_ref[...],
                 preferred_element_type=jnp.float32) + b1_ref[...]
    ff = jnp.maximum(ff, 0.0)                               # ReLU
    ff2 = jnp.dot(ff.astype(jnp.bfloat16), w2_ref[...],
                  preferred_element_type=jnp.float32) + b2_ref[...]
    out = _layer_norm(h1 + ff2, ln2g_ref[...], ln2b_ref[...], eps)

    # ---- residual + fc head (fc_w zero-padded to 128 lanes -> lane-dense store) ----
    y = out + x                                             # out = out + residual
    o_ref[...] = (jnp.dot(y.astype(jnp.bfloat16), fcw_ref[...],
                          preferred_element_type=jnp.float32)
                  + fcb_ref[...]).astype(o_ref.dtype)


def fused_forward_pallas(emb_flat, pool_mask, p, cfg, batch, seq_len):
    D = cfg.input_dim
    args = (emb_flat, pool_mask, p["conv_w"], p["conv_b"],
            p["wv"], p["bv"], p["wo"], p["bo"],
            p["ln1_g"], p["ln1_b"], p["w1"], p["b1"], p["w2"], p["b2"],
            p["ln2_g"], p["ln2_b"], p["fc_w"], p["fc_b"])
    return pl.pallas_call(
        functools.partial(_fused_kernel, batch=batch, seq_len=seq_len,
                          max_fs=max(cfg.filter_sizes), eps=cfg.ln_eps),
        out_shape=jax.ShapeDtypeStruct((batch, D), jnp.float32),
        grid=(1,),
        in_specs=[_full_spec(a.shape) for a in args],
        out_specs=_full_spec((batch, D)),
        compiler_params=pltpu.CompilerParams(
            dimension_semantics=("arbitrary",),
            vmem_limit_bytes=16 * 1024 * 1024),
    )(*args)


# ------------------------------ model definition ------------------------------

class Config:
    vocab = 32100                     # FSM(num_embeddings=32100, ...)
    embed_dim = 64
    filter_sizes = (2, 3, 4, 5)
    num_channel = 32
    input_dim = len(filter_sizes) * num_channel   # 128 == transformer d_model
    num_heads = 4                     # head_dim = 32 (unused: softmax over 1 key == 1)
    ffn_dim = 256
    num_layers = 2
    output_dim = 8
    ln_eps = 1e-5
    pad_idx = 0


def init_params(key, cfg):
    ks = iter(jax.random.split(key, 32))
    E, C, D, FF = cfg.embed_dim, cfg.num_channel, cfg.input_dim, cfg.ffn_dim
    max_fs = max(cfg.filter_sizes)
    assert cfg.output_dim <= D

    def nrm(shape, std, dtype=jnp.bfloat16):
        return (std * jax.random.normal(next(ks), shape, jnp.float32)).astype(dtype)

    emb = 0.1 * jax.random.normal(next(ks), (cfg.vocab, E), jnp.float32)
    emb = emb.at[cfg.pad_idx].set(0.0).astype(jnp.bfloat16)   # nn.Embedding(padding_idx=0)

    # TextCNN weights re-laid as one (E, max_fs*D) matrix ordered (tap, filter, channel):
    # columns [j*D + f*C : j*D + (f+1)*C] hold tap j of filter f (== torch Conv2d
    # weight[:, 0, j, :].T), zero where filter f has no tap j -> all in-kernel slices are
    # 128-lane aligned.
    conv_w = np.zeros((E, max_fs * D), np.float32)
    for f, fs in enumerate(cfg.filter_sizes):
        for j in range(fs):
            w = 0.1 * jax.random.normal(next(ks), (E, C), jnp.float32)
            conv_w[:, j * D + f * C: j * D + (f + 1) * C] = np.asarray(w)
    conv_w = jnp.asarray(conv_w, jnp.bfloat16)
    conv_b = nrm((1, D), 0.02, jnp.float32)

    layer = {
        # Only Wv / Wo are needed: with a length-1 token axis softmax == 1, so ctx == V.
        "wv":   nrm((D, D), 0.05),
        "bv":   jnp.zeros((1, D), jnp.float32),
        "wo":   nrm((D, D), 0.05),
        "bo":   jnp.zeros((1, D), jnp.float32),
        "ln1_g": jnp.ones((1, D), jnp.float32),
        "ln1_b": jnp.zeros((1, D), jnp.float32),
        "w1":   nrm((D, FF), 0.05),
        "b1":   jnp.zeros((1, FF), jnp.float32),
        "w2":   nrm((FF, D), 0.05),
        "b2":   jnp.zeros((1, D), jnp.float32),
        "ln2_g": jnp.ones((1, D), jnp.float32),
        "ln2_b": jnp.zeros((1, D), jnp.float32),
    }

    # fc head zero-padded to 128 output lanes (lane-dense final store); wrapper slices
    # the first output_dim columns.
    fc_w = np.zeros((D, D), np.float32)
    fc_w[:, :cfg.output_dim] = np.asarray(
        0.05 * jax.random.normal(next(ks), (D, cfg.output_dim), jnp.float32))
    fc_w = jnp.asarray(fc_w, jnp.bfloat16)
    fc_b = jnp.zeros((1, D), jnp.float32)

    return {"embedding": emb, "conv_w": conv_w, "conv_b": conv_b,
            **layer, "fc_w": fc_w, "fc_b": fc_b}


def transformer_encoder_forward(params, src, cfg):
    B, S = src.shape
    D, C = cfg.input_dim, cfg.num_channel

    # TODO(synk): data-dependent embedding gather over the 32100-row table stays in JAX glue.
    emb_flat = jnp.take(params["embedding"], src.reshape(-1), axis=0)     # (B*S, E) bf16

    # Static per-(position, filter) validity mask for the max-pool: conv position t is
    # valid for filter f iff t <= S - fs_f.  Built at trace time (compile-time constant).
    mask = np.zeros((B * S, D), np.float32)
    for f, fs in enumerate(cfg.filter_sizes):
        t_valid = (np.arange(S) <= S - fs).astype(np.float32)             # (S,)
        mask[:, f * C:(f + 1) * C] = np.tile(t_valid, B)[:, None]
    pool_mask = jnp.asarray(mask)

    # Reference loop applies the SAME encoder layer to the SAME `output` every iteration
    # (not chained) -> only the final application matters -> one fused pass. self.norm is
    # None -> skipped; residual add and fc head are fused into the same kernel.
    out_pad = fused_forward_pallas(emb_flat, pool_mask, params, cfg, B, S)  # (B, 128)
    return out_pad[:, :cfg.output_dim]


# ---------------------------------- main --------------------------------------

if __name__ == "__main__":
    cfg = Config()
    B, S = 8, 16

    key = jax.random.PRNGKey(0)
    k_ids, k_param = jax.random.split(key)

    src = jax.random.randint(k_ids, (B, S), 1, cfg.vocab, dtype=jnp.int32)
    src = src.at[:, -2:].set(cfg.pad_idx)            # trailing pad tokens (padding_idx = 0)

    params = init_params(k_param, cfg)
    out = transformer_encoder_forward(params, src, cfg)
    out = jax.block_until_ready(out)

    assert out.shape == (B, cfg.output_dim) and out.dtype == jnp.float32
    assert bool(jnp.all(jnp.isfinite(out)))
    print("KERNEL_OK")
</pallas_src>

<mosaic_0001>
module attributes {stable_mosaic.version = 11 : i64} {
  func.func @_fused_kernel(%arg0: i32, %arg1: memref<128x64xbf16, #tpu.memory_space<vmem>>, %arg2: memref<128x128xf32, #tpu.memory_space<vmem>>, %arg3: memref<64x640xbf16, #tpu.memory_space<vmem>>, %arg4: memref<1x128xf32, #tpu.memory_space<vmem>>, %arg5: memref<128x128xbf16, #tpu.memory_space<vmem>>, %arg6: memref<1x128xf32, #tpu.memory_space<vmem>>, %arg7: memref<128x128xbf16, #tpu.memory_space<vmem>>, %arg8: memref<1x128xf32, #tpu.memory_space<vmem>>, %arg9: memref<1x128xf32, #tpu.memory_space<vmem>>, %arg10: memref<1x128xf32, #tpu.memory_space<vmem>>, %arg11: memref<128x256xbf16, #tpu.memory_space<vmem>>, %arg12: memref<1x256xf32, #tpu.memory_space<vmem>>, %arg13: memref<256x128xbf16, #tpu.memory_space<vmem>>, %arg14: memref<1x128xf32, #tpu.memory_space<vmem>>, %arg15: memref<1x128xf32, #tpu.memory_space<vmem>>, %arg16: memref<1x128xf32, #tpu.memory_space<vmem>>, %arg17: memref<128x128xbf16, #tpu.memory_space<vmem>>, %arg18: memref<1x128xf32, #tpu.memory_space<vmem>>, %arg19: memref<8x128xf32, #tpu.memory_space<vmem>>) attributes {dimension_semantics = [#tpu.dimension_semantics<arbitrary>], iteration_bounds = array<i64: 1>, scalar_prefetch = 0 : i64, scratch_operands = 0 : i64, tpu.core_type = #tpu.core_type<tc>, window_params = [{pipeline_mode = #tpu.pipeline_mode<synchronous>, transform_indices = @transform_0, window_bounds = array<i64: 128, 64>}, {pipeline_mode = #tpu.pipeline_mode<synchronous>, transform_indices = @transform_1, window_bounds = array<i64: 128, 128>}, {pipeline_mode = #tpu.pipeline_mode<synchronous>, transform_indices = @transform_2, window_bounds = array<i64: 64, 640>}, {pipeline_mode = #tpu.pipeline_mode<synchronous>, transform_indices = @transform_3, window_bounds = array<i64: 1, 128>}, {pipeline_mode = #tpu.pipeline_mode<synchronous>, transform_indices = @transform_4, window_bounds = array<i64: 128, 128>}, {pipeline_mode = #tpu.pipeline_mode<synchronous>, transform_indices = @transform_5, window_bounds = array<i64: 1, 128>}, {pipeline_mode = #tpu.pipeline_mode<synchronous>, transform_indices = @transform_6, window_bounds = array<i64: 128, 128>}, {pipeline_mode = #tpu.pipeline_mode<synchronous>, transform_indices = @transform_7, window_bounds = array<i64: 1, 128>}, {pipeline_mode = #tpu.pipeline_mode<synchronous>, transform_indices = @transform_8, window_bounds = array<i64: 1, 128>}, {pipeline_mode = #tpu.pipeline_mode<synchronous>, transform_indices = @transform_9, window_bounds = array<i64: 1, 128>}, {pipeline_mode = #tpu.pipeline_mode<synchronous>, transform_indices = @transform_10, window_bounds = array<i64: 128, 256>}, {pipeline_mode = #tpu.pipeline_mode<synchronous>, transform_indices = @transform_11, window_bounds = array<i64: 1, 256>}, {pipeline_mode = #tpu.pipeline_mode<synchronous>, transform_indices = @transform_12, window_bounds = array<i64: 256, 128>}, {pipeline_mode = #tpu.pipeline_mode<synchronous>, transform_indices = @transform_13, window_bounds = array<i64: 1, 128>}, {pipeline_mode = #tpu.pipeline_mode<synchronous>, transform_indices = @transform_14, window_bounds = array<i64: 1, 128>}, {pipeline_mode = #tpu.pipeline_mode<synchronous>, transform_indices = @transform_15, window_bounds = array<i64: 1, 128>}, {pipeline_mode = #tpu.pipeline_mode<synchronous>, transform_indices = @transform_16, window_bounds = array<i64: 128, 128>}, {pipeline_mode = #tpu.pipeline_mode<synchronous>, transform_indices = @transform_17, window_bounds = array<i64: 1, 128>}, {pipeline_mode = #tpu.pipeline_mode<synchronous>, transform_indices = @transform_18, window_bounds = array<i64: 8, 128>}]} {
    %c0 = arith.constant 0 : index
    %c0_0 = arith.constant 0 : index
    %0 = vector.load %arg1[%c0, %c0_0] : memref<128x64xbf16, #tpu.memory_space<vmem>>, vector<128x64xbf16>
    %c0_1 = arith.constant 0 : index
    %c0_2 = arith.constant 0 : index
    %1 = vector.load %arg3[%c0_1, %c0_2] : memref<64x640xbf16, #tpu.memory_space<vmem>>, vector<64x640xbf16>
    %cst = arith.constant dense<0.000000e+00> : vector<128x640xf32>
    %2 = tpu.matmul %0, %1, %cst {dimension_numbers = #tpu.dot_dimension_numbers<[1], [0], [0], [1], [0, 0, 1, 1], [], []>} : vector<128x64xbf16>, vector<64x640xbf16>, vector<128x640xf32> -> vector<128x640xf32>
    %3 = vector.extract_strided_slice %2 {offsets = [0, 0], sizes = [128, 128], strides = [1, 1]} : vector<128x640xf32> to vector<128x128xf32>
    %4 = vector.extract_strided_slice %2 {offsets = [0, 128], sizes = [128, 128], strides = [1, 1]} : vector<128x640xf32> to vector<128x128xf32>
    %c127_i32 = arith.constant 127 : i32
    %5 = tpu.dynamic_rotate %4 by %c127_i32 dim 0 : vector<128x128xf32>, i32 -> vector<128x128xf32>
    %6 = arith.addf %3, %5 : vector<128x128xf32>
    %7 = vector.extract_strided_slice %2 {offsets = [0, 256], sizes = [128, 128], strides = [1, 1]} : vector<128x640xf32> to vector<128x128xf32>
    %c126_i32 = arith.constant 126 : i32
    %8 = tpu.dynamic_rotate %7 by %c126_i32 dim 0 : vector<128x128xf32>, i32 -> vector<128x128xf32>
    %9 = arith.addf %6, %8 : vector<128x128xf32>
    %10 = vector.extract_strided_slice %2 {offsets = [0, 384], sizes = [128, 128], strides = [1, 1]} : vector<128x640xf32> to vector<128x128xf32>
    %c125_i32 = arith.constant 125 : i32
    %11 = tpu.dynamic_rotate %10 by %c125_i32 dim 0 : vector<128x128xf32>, i32 -> vector<128x128xf32>
    %12 = arith.addf %9, %11 : vector<128x128xf32>
    %13 = vector.extract_strided_slice %2 {offsets = [0, 512], sizes = [128, 128], strides = [1, 1]} : vector<128x640xf32> to vector<128x128xf32>
    %c124_i32 = arith.constant 124 : i32
    %14 = tpu.dynamic_rotate %13 by %c124_i32 dim 0 : vector<128x128xf32>, i32 -> vector<128x128xf32>
    %15 = arith.addf %12, %14 : vector<128x128xf32>
    %c0_3 = arith.constant 0 : index
    %c0_4 = arith.constant 0 : index
    %16 = vector.load %arg4[%c0_3, %c0_4] : memref<1x128xf32, #tpu.memory_space<vmem>>, vector<1x128xf32>
    %17 = vector.broadcast %16 : vector<1x128xf32> to vector<128x128xf32>
    %18 = arith.addf %15, %17 : vector<128x128xf32>
    %cst_5 = arith.constant 0.000000e+00 : f32
    %19 = vector.broadcast %cst_5 : f32 to vector<128x128xf32>
    %20 = arith.maximumf %18, %19 : vector<128x128xf32>
    %c0_6 = arith.constant 0 : index
    %c0_7 = arith.constant 0 : index
    %21 = vector.load %arg2[%c0_6, %c0_7] : memref<128x128xf32, #tpu.memory_space<vmem>>, vector<128x128xf32>
    %22 = arith.mulf %20, %21 : vector<128x128xf32>
    %23 = vector.shape_cast %22 : vector<128x128xf32> to vector<8x16x128xf32>
    %cst_8 = arith.constant dense<0xFF800000> : vector<8x128xf32>
    %24 = vector.multi_reduction <maximumf>, %23, %cst_8 [1] : vector<8x16x128xf32> to vector<8x128xf32>
    %25 = arith.truncf %24 : vector<8x128xf32> to vector<8x128xbf16>
    %c0_9 = arith.constant 0 : index
    %c0_10 = arith.constant 0 : index
    %26 = vector.load %arg5[%c0_9, %c0_10] : memref<128x128xbf16, #tpu.memory_space<vmem>>, vector<128x128xbf16>
    %cst_11 = arith.constant dense<0.000000e+00> : vector<8x128xf32>
    %27 = tpu.matmul %25, %26, %cst_11 {dimension_numbers = #tpu.dot_dimension_numbers<[1], [0], [0], [1], [0, 0, 1, 1], [], []>} : vector<8x128xbf16>, vector<128x128xbf16>, vector<8x128xf32> -> vector<8x128xf32>
    %c0_12 = arith.constant 0 : index
    %c0_13 = arith.constant 0 : index
    %28 = vector.load %arg6[%c0_12, %c0_13] : memref<1x128xf32, #tpu.memory_space<vmem>>, vector<1x128xf32>
    %29 = vector.broadcast %28 : vector<1x128xf32> to vector<8x128xf32>
    %30 = arith.addf %27, %29 : vector<8x128xf32>
    %31 = arith.truncf %30 : vector<8x128xf32> to vector<8x128xbf16>
    %c0_14 = arith.constant 0 : index
    %c0_15 = arith.constant 0 : index
    %32 = vector.load %arg7[%c0_14, %c0_15] : memref<128x128xbf16, #tpu.memory_space<vmem>>, vector<128x128xbf16>
    %cst_16 = arith.constant dense<0.000000e+00> : vector<8x128xf32>
    %33 = tpu.matmul %31, %32, %cst_16 {dimension_numbers = #tpu.dot_dimension_numbers<[1], [0], [0], [1], [0, 0, 1, 1], [], []>} : vector<8x128xbf16>, vector<128x128xbf16>, vector<8x128xf32> -> vector<8x128xf32>
    %c0_17 = arith.constant 0 : index
    %c0_18 = arith.constant 0 : index
    %34 = vector.load %arg8[%c0_17, %c0_18] : memref<1x128xf32, #tpu.memory_space<vmem>>, vector<1x128xf32>
    %35 = vector.broadcast %34 : vector<1x128xf32> to vector<8x128xf32>
    %36 = arith.addf %33, %35 : vector<8x128xf32>
    %37 = arith.addf %24, %36 : vector<8x128xf32>
    %c0_19 = arith.constant 0 : index
    %c0_20 = arith.constant 0 : index
    %38 = vector.load %arg9[%c0_19, %c0_20] : memref<1x128xf32, #tpu.memory_space<vmem>>, vector<1x128xf32>
    %c0_21 = arith.constant 0 : index
    %c0_22 = arith.constant 0 : index
    %39 = vector.load %arg10[%c0_21, %c0_22] : memref<1x128xf32, #tpu.memory_space<vmem>>, vector<1x128xf32>
    %cst_23 = arith.constant dense<0.000000e+00> : vector<8xf32>
    %40 = vector.multi_reduction <add>, %37, %cst_23 [1] : vector<8x128xf32> to vector<8xf32>
    %41 = vector.shape_cast %40 : vector<8xf32> to vector<8x1xf32>
    %cst_24 = arith.constant 1.280000e+02 : f32
    %42 = vector.broadcast %cst_24 : f32 to vector<8x1xf32>
    %43 = arith.divf %41, %42 : vector<8x1xf32>
    %44 = vector.broadcast %43 : vector<8x1xf32> to vector<8x128xf32>
    %45 = arith.subf %37, %44 : vector<8x128xf32>
    %46 = arith.mulf %45, %45 : vector<8x128xf32>
    %cst_25 = arith.constant dense<0.000000e+00> : vector<8xf32>
    %47 = vector.multi_reduction <add>, %46, %cst_25 [1] : vector<8x128xf32> to vector<8xf32>
    %48 = vector.shape_cast %47 : vector<8xf32> to vector<8x1xf32>
    %cst_26 = arith.constant 1.280000e+02 : f32
    %49 = vector.broadcast %cst_26 : f32 to vector<8x1xf32>
    %50 = arith.divf %48, %49 : vector<8x1xf32>
    %cst_27 = arith.constant 9.99999974E-6 : f32
    %51 = vector.broadcast %cst_27 : f32 to vector<8x1xf32>
    %52 = arith.addf %50, %51 : vector<8x1xf32>
    %53 = math.rsqrt %52 : vector<8x1xf32>
    %54 = vector.broadcast %53 : vector<8x1xf32> to vector<8x128xf32>
    %55 = arith.mulf %45, %54 : vector<8x128xf32>
    %56 = vector.broadcast %38 : vector<1x128xf32> to vector<8x128xf32>
    %57 = arith.mulf %55, %56 : vector<8x128xf32>
    %58 = vector.broadcast %39 : vector<1x128xf32> to vector<8x128xf32>
    %59 = arith.addf %57, %58 : vector<8x128xf32>
    %60 = arith.truncf %59 : vector<8x128xf32> to vector<8x128xbf16>
    %c0_28 = arith.constant 0 : index
    %c0_29 = arith.constant 0 : index
    %61 = vector.load %arg11[%c0_28, %c0_29] : memref<128x256xbf16, #tpu.memory_space<vmem>>, vector<128x256xbf16>
    %cst_30 = arith.constant dense<0.000000e+00> : vector<8x256xf32>
    %62 = tpu.matmul %60, %61, %cst_30 {dimension_numbers = #tpu.dot_dimension_numbers<[1], [0], [0], [1], [0, 0, 1, 1], [], []>} : vector<8x128xbf16>, vector<128x256xbf16>, vector<8x256xf32> -> vector<8x256xf32>
    %c0_31 = arith.constant 0 : index
    %c0_32 = arith.constant 0 : index
    %63 = vector.load %arg12[%c0_31, %c0_32] : memref<1x256xf32, #tpu.memory_space<vmem>>, vector<1x256xf32>
    %64 = vector.broadcast %63 : vector<1x256xf32> to vector<8x256xf32>
    %65 = arith.addf %62, %64 : vector<8x256xf32>
    %cst_33 = arith.constant 0.000000e+00 : f32
    %66 = vector.broadcast %cst_33 : f32 to vector<8x256xf32>
    %67 = arith.maximumf %65, %66 : vector<8x256xf32>
    %68 = arith.truncf %67 : vector<8x256xf32> to vector<8x256xbf16>
    %c0_34 = arith.constant 0 : index
    %c0_35 = arith.constant 0 : index
    %69 = vector.load %arg13[%c0_34, %c0_35] : memref<256x128xbf16, #tpu.memory_space<vmem>>, vector<256x128xbf16>
    %cst_36 = arith.constant dense<0.000000e+00> : vector<8x128xf32>
    %70 = tpu.matmul %68, %69, %cst_36 {dimension_numbers = #tpu.dot_dimension_numbers<[1], [0], [0], [1], [0, 0, 1, 1], [], []>} : vector<8x256xbf16>, vector<256x128xbf16>, vector<8x128xf32> -> vector<8x128xf32>
    %c0_37 = arith.constant 0 : index
    %c0_38 = arith.constant 0 : index
    %71 = vector.load %arg14[%c0_37, %c0_38] : memref<1x128xf32, #tpu.memory_space<vmem>>, vector<1x128xf32>
    %72 = vector.broadcast %71 : vector<1x128xf32> to vector<8x128xf32>
    %73 = arith.addf %70, %72 : vector<8x128xf32>
    %74 = arith.addf %59, %73 : vector<8x128xf32>
    %c0_39 = arith.constant 0 : index
    %c0_40 = arith.constant 0 : index
    %75 = vector.load %arg15[%c0_39, %c0_40] : memref<1x128xf32, #tpu.memory_space<vmem>>, vector<1x128xf32>
    %c0_41 = arith.constant 0 : index
    %c0_42 = arith.constant 0 : index
    %76 = vector.load %arg16[%c0_41, %c0_42] : memref<1x128xf32, #tpu.memory_space<vmem>>, vector<1x128xf32>
    %cst_43 = arith.constant dense<0.000000e+00> : vector<8xf32>
    %77 = vector.multi_reduction <add>, %74, %cst_43 [1] : vector<8x128xf32> to vector<8xf32>
    %78 = vector.shape_cast %77 : vector<8xf32> to vector<8x1xf32>
    %cst_44 = arith.constant 1.280000e+02 : f32
    %79 = vector.broadcast %cst_44 : f32 to vector<8x1xf32>
    %80 = arith.divf %78, %79 : vector<8x1xf32>
    %81 = vector.broadcast %80 : vector<8x1xf32> to vector<8x128xf32>
    %82 = arith.subf %74, %81 : vector<8x128xf32>
    %83 = arith.mulf %82, %82 : vector<8x128xf32>
    %cst_45 = arith.constant dense<0.000000e+00> : vector<8xf32>
    %84 = vector.multi_reduction <add>, %83, %cst_45 [1] : vector<8x128xf32> to vector<8xf32>
    %85 = vector.shape_cast %84 : vector<8xf32> to vector<8x1xf32>
    %cst_46 = arith.constant 1.280000e+02 : f32
    %86 = vector.broadcast %cst_46 : f32 to vector<8x1xf32>
    %87 = arith.divf %85, %86 : vector<8x1xf32>
    %cst_47 = arith.constant 9.99999974E-6 : f32
    %88 = vector.broadcast %cst_47 : f32 to vector<8x1xf32>
    %89 = arith.addf %87, %88 : vector<8x1xf32>
    %90 = math.rsqrt %89 : vector<8x1xf32>
    %91 = vector.broadcast %90 : vector<8x1xf32> to vector<8x128xf32>
    %92 = arith.mulf %82, %91 : vector<8x128xf32>
    %93 = vector.broadcast %75 : vector<1x128xf32> to vector<8x128xf32>
    %94 = arith.mulf %92, %93 : vector<8x128xf32>
    %95 = vector.broadcast %76 : vector<1x128xf32> to vector<8x128xf32>
    %96 = arith.addf %94, %95 : vector<8x128xf32>
    %97 = arith.addf %96, %24 : vector<8x128xf32>
    %98 = arith.truncf %97 : vector<8x128xf32> to vector<8x128xbf16>
    %c0_48 = arith.constant 0 : index
    %c0_49 = arith.constant 0 : index
    %99 = vector.load %arg17[%c0_48, %c0_49] : memref<128x128xbf16, #tpu.memory_space<vmem>>, vector<128x128xbf16>
    %cst_50 = arith.constant dense<0.000000e+00> : vector<8x128xf32>
    %100 = tpu.matmul %98, %99, %cst_50 {dimension_numbers = #tpu.dot_dimension_numbers<[1], [0], [0], [1], [0, 0, 1, 1], [], []>} : vector<8x128xbf16>, vector<128x128xbf16>, vector<8x128xf32> -> vector<8x128xf32>
    %c0_51 = arith.constant 0 : index
    %c0_52 = arith.constant 0 : index
    %101 = vector.load %arg18[%c0_51, %c0_52] : memref<1x128xf32, #tpu.memory_space<vmem>>, vector<1x128xf32>
    %102 = vector.broadcast %101 : vector<1x128xf32> to vector<8x128xf32>
    %103 = arith.addf %100, %102 : vector<8x128xf32>
    %c0_53 = arith.constant 0 : index
    %c0_54 = arith.constant 0 : index
    %104 = vector.load %arg19[%c0_53, %c0_54] : memref<8x128xf32, #tpu.memory_space<vmem>>, vector<8x128xf32>
    tpu.vector_store %arg19[%c0_53, %c0_54], %103 {strides = array<i32>} : memref<8x128xf32, #tpu.memory_space<vmem>>, vector<8x128xf32>,
    return
  }
  func.func @transform_0(%arg0: i32) -> (i32, i32) {
    %c0_i32 = arith.constant 0 : i32
    %c0_i32_0 = arith.constant 0 : i32
    %c0_i32_1 = arith.constant 0 : i32
    return %c0_i32, %c0_i32_0 : i32, i32
  }
  func.func @transform_1(%arg0: i32) -> (i32, i32) {
    %c0_i32 = arith.constant 0 : i32
    %c0_i32_0 = arith.constant 0 : i32
    %c0_i32_1 = arith.constant 0 : i32
    return %c0_i32, %c0_i32_0 : i32, i32
  }
  func.func @transform_2(%arg0: i32) -> (i32, i32) {
    %c0_i32 = arith.constant 0 : i32
    %c0_i32_0 = arith.constant 0 : i32
    %c0_i32_1 = arith.constant 0 : i32
    return %c0_i32, %c0_i32_0 : i32, i32
  }
  func.func @transform_3(%arg0: i32) -> (i32, i32) {
    %c0_i32 = arith.constant 0 : i32
    %c0_i32_0 = arith.constant 0 : i32
    %c0_i32_1 = arith.constant 0 : i32
    return %c0_i32, %c0_i32_0 : i32, i32
  }
  func.func @transform_4(%arg0: i32) -> (i32, i32) {
    %c0_i32 = arith.constant 0 : i32
    %c0_i32_0 = arith.constant 0 : i32
    %c0_i32_1 = arith.constant 0 : i32
    return %c0_i32, %c0_i32_0 : i32, i32
  }
  func.func @transform_5(%arg0: i32) -> (i32, i32) {
    %c0_i32 = arith.constant 0 : i32
    %c0_i32_0 = arith.constant 0 : i32
    %c0_i32_1 = arith.constant 0 : i32
    return %c0_i32, %c0_i32_0 : i32, i32
  }
  func.func @transform_6(%arg0: i32) -> (i32, i32) {
    %c0_i32 = arith.constant 0 : i32
    %c0_i32_0 = arith.constant 0 : i32
    %c0_i32_1 = arith.constant 0 : i32
    return %c0_i32, %c0_i32_0 : i32, i32
  }
  func.func @transform_7(%arg0: i32) -> (i32, i32) {
    %c0_i32 = arith.constant 0 : i32
    %c0_i32_0 = arith.constant 0 : i32
    %c0_i32_1 = arith.constant 0 : i32
    return %c0_i32, %c0_i32_0 : i32, i32
  }
  func.func @transform_8(%arg0: i32) -> (i32, i32) {
    %c0_i32 = arith.constant 0 : i32
    %c0_i32_0 = arith.constant 0 : i32
    %c0_i32_1 = arith.constant 0 : i32
    return %c0_i32, %c0_i32_0 : i32, i32
  }
  func.func @transform_9(%arg0: i32) -> (i32, i32) {
    %c0_i32 = arith.constant 0 : i32
    %c0_i32_0 = arith.constant 0 : i32
    %c0_i32_1 = arith.constant 0 : i32
    return %c0_i32, %c0_i32_0 : i32, i32
  }
  func.func @transform_10(%arg0: i32) -> (i32, i32) {
    %c0_i32 = arith.constant 0 : i32
    %c0_i32_0 = arith.constant 0 : i32
    %c0_i32_1 = arith.constant 0 : i32
    return %c0_i32, %c0_i32_0 : i32, i32
  }
  func.func @transform_11(%arg0: i32) -> (i32, i32) {
    %c0_i32 = arith.constant 0 : i32
    %c0_i32_0 = arith.constant 0 : i32
    %c0_i32_1 = arith.constant 0 : i32
    return %c0_i32, %c0_i32_0 : i32, i32
  }
  func.func @transform_12(%arg0: i32) -> (i32, i32) {
    %c0_i32 = arith.constant 0 : i32
    %c0_i32_0 = arith.constant 0 : i32
    %c0_i32_1 = arith.constant 0 : i32
    return %c0_i32, %c0_i32_0 : i32, i32
  }
  func.func @transform_13(%arg0: i32) -> (i32, i32) {
    %c0_i32 = arith.constant 0 : i32
    %c0_i32_0 = arith.constant 0 : i32
    %c0_i32_1 = arith.constant 0 : i32
    return %c0_i32, %c0_i32_0 : i32, i32
  }
  func.func @transform_14(%arg0: i32) -> (i32, i32) {
    %c0_i32 = arith.constant 0 : i32
    %c0_i32_0 = arith.constant 0 : i32
    %c0_i32_1 = arith.constant 0 : i32
    return %c0_i32, %c0_i32_0 : i32, i32
  }
  func.func @transform_15(%arg0: i32) -> (i32, i32) {
    %c0_i32 = arith.constant 0 : i32
    %c0_i32_0 = arith.constant 0 : i32
    %c0_i32_1 = arith.constant 0 : i32
    return %c0_i32, %c0_i32_0 : i32, i32
  }
  func.func @transform_16(%arg0: i32) -> (i32, i32) {
    %c0_i32 = arith.constant 0 : i32
    %c0_i32_0 = arith.constant 0 : i32
    %c0_i32_1 = arith.constant 0 : i32
    return %c0_i32, %c0_i32_0 : i32, i32
  }
  func.func @transform_17(%arg0: i32) -> (i32, i32) {
    %c0_i32 = arith.constant 0 : i32
    %c0_i32_0 = arith.constant 0 : i32
    %c0_i32_1 = arith.constant 0 : i32
    return %c0_i32, %c0_i32_0 : i32, i32
  }
  func.func @transform_18(%arg0: i32) -> (i32, i32) {
    %c0_i32 = arith.constant 0 : i32
    %c0_i32_0 = arith.constant 0 : i32
    %c0_i32_1 = arith.constant 0 : i32
    return %c0_i32, %c0_i32_0 : i32, i32
  }
}

</mosaic_0001>

<bundles_post_ra>
// kernel: tpu_custom_call.1
= control target key start
LH: loop header
LB: loop body
LE: loop exit
PB: predicated region body
PF: predicated region fallthrough
CT: control target
= control target key end

     0   :  { %s3610_s0 = inlined_call_operand.vmem [shape: bf16[128,64], index: 0, kind: input, shape index: {}]   ;;  %s3611_s1 = inlined_call_operand.hbm [shape: f32[128,128], index: 1, kind: input, shape index: {}]   ;;  %s3612_s2 = inlined_call_operand.hbm [shape: bf16[64,640], index: 2, kind: input, shape index: {}]   ;;  %s3613_s3 = inlined_call_operand.vmem [shape: f32[1,128], index: 3, kind: input, shape index: {}]   ;;  %s3614_s4 = inlined_call_operand.hbm [shape: bf16[128,128], index: 4, kind: input, shape index: {}]   ;;  %s3615_s5 = inlined_call_operand.vmem [shape: f32[1,128], index: 5, kind: input, shape index: {}]   ;;  %s3616_s6 = inlined_call_operand.hbm [shape: bf16[128,128], index: 6, kind: input, shape index: {}]   ;;  %s3617_s7 = inlined_call_operand.vmem [shape: f32[1,128], index: 7, kind: input, shape index: {}]   ;;  %s3618_s8 = inlined_call_operand.hbm [shape: f32[1,128], index: 8, kind: input, shape index: {}]   ;;  %s3619_s9 = inlined_call_operand.hbm [shape: f32[1,128], index: 9, kind: input, shape index: {}]   ;;  %s3620_s10 = inlined_call_operand.vmem [shape: bf16[128,256], index: 10, kind: input, shape index: {}]   ;;  %s3621_s11 = inlined_call_operand.vmem [shape: f32[1,256], index: 11, kind: input, shape index: {}]   ;;  %s3622_s12 = inlined_call_operand.hbm [shape: bf16[256,128], index: 12, kind: input, shape index: {}]   ;;  %s3623_s13 = inlined_call_operand.vmem [shape: f32[1,128], index: 13, kind: input, shape index: {}]   ;;  %s3624_s14 = inlined_call_operand.vmem [shape: f32[1,128], index: 14, kind: input, shape index: {}]   ;;  %s3625_s15 = inlined_call_operand.vmem [shape: f32[1,128], index: 15, kind: input, shape index: {}]   ;;  %s3626_s16 = inlined_call_operand.hbm [shape: bf16[128,128], index: 16, kind: input, shape index: {}]   ;;  %s3627_s17 = inlined_call_operand.vmem [shape: f32[1,128], index: 17, kind: input, shape index: {}]   ;;  %s3628_s18 = inlined_call_operand.hbm [shape: f32[8,128], index: 18, kind: output, shape index: {}]  }
   0x1   :  { %3633 = sst [smem:[#allocation23_spill]] %s3610_s0 }
   0x2   :  { %3634 = sst [smem:[#allocation24_spill]] %s3611_s1 }
   0x3   :  { %3635 = sst [smem:[#allocation25_spill]] %s3612_s2 }
   0x4   :  { %3636 = sst [smem:[#allocation26_spill]] %s3627_s17 }
   0x5   :  { %3637 = sst [smem:[#allocation27_spill]] %s3628_s18 }
   0x6   :  { %23 = vsyncpa [#allocation3], 0 }
   0x7   :  { %24 = vsyncpa [#allocation6], 0 }
   0x8   :  { %25 = vsyncpa [#allocation9], 0 }
   0x9   :  { %26 = vsyncpa [#allocation12], 0 }
   0xa   :  { %27 = vsyncpa [#allocation15], 0 }
   0xb   :  { %28 = vsyncpa [#allocation4], 0  ;;  %s2756_s27 = smov [#allocation5]   ;;  %s3638_s0 = sld [smem:[#allocation25_spill]] }
   0xc   :  { %s48_s28 = sshll.u32 %s2756_s27, 4  ;;  %s49_s28 = int_to_ptr.vmem [resolvable:$true] %s48_s28 }
  0x11   :  { %s2546_s19 = scalar_lea.hbm %s3638_s0, 2560 }
  0x12   :  { %p2547_p0 = scmp.ne.s32.totalorder %s3638_s0, %s2546_s19  ;;  %p2550_p1 = scmp.lt.u32.totalorder %s2546_s19, %s3638_s0 }
  0x14   :  { %p2552_p2 = pnand %p2550_p1, %p2547_p0 }
  0x16   :  { %2555 = shalt.err (!%p2552_p2)
}
  0x17   :  { %s2556_s2 = scalar_lea.vmem %s49_s28, 2560  ;;  %p2561_p4 = scmp.lt.s32.totalorder %s49_s28, %s49_s28 }
  0x18   :  { %p2557_p3 = scmp.ne.s32.totalorder %s49_s28, %s2556_s2  ;;  %p2562_p5 = scmp.lt.s32.totalorder %s2556_s2, %s2556_s2 }
  0x1a   :  { %p2563_p6 = por %p2562_p5, %p2561_p4 }
  0x1c   :  { %p2564_p7 = pnand %p2563_p6, %p2557_p3 }
  0x1e   :  { %2567 = shalt.err (!%p2564_p7)
}
  0x1f   :  { %s2757_s23 = smov 320   ;;  %s2758_s24 = smov 20  }
  0x20   :  { %54 = dma.hbm_to_vmem [thread:$0]  %s3638_s0, 2560, %s49_s28, [#allocation6], %s2757_s23, %s2757_s23, %s2758_s24  }
  0x21   :  { %s2759_s27 = smov [#allocation8]   ;;  %s2760_s30 = smov [#allocation11]  }
  0x22   :  { %s76_s29 = sshll.u32 %s2759_s27, 4  ;;  %s101_s19 = sshll.u32 %s2760_s30, 4  ;;  %s77_s29 = int_to_ptr.vmem [resolvable:$true] %s76_s29  ;;  %s102_s19 = int_to_ptr.vmem [resolvable:$true] %s101_s19 }
  0x23   :  { %s2568_s21 = scalar_lea.hbm %s3616_s6, 1024 }
  0x24   :  { %p2569_p8 = scmp.ne.s32.totalorder %s3616_s6, %s2568_s21  ;;  %p2572_p9 = scmp.lt.u32.totalorder %s2568_s21, %s3616_s6 }
  0x26   :  { %p2574_p10 = pnand %p2572_p9, %p2569_p8 }
  0x28   :  { %2577 = shalt.err (!%p2574_p10)
}
  0x29   :  { %s2578_s28 = scalar_lea.vmem %s77_s29, 1024  ;;  %p2583_p12 = scmp.lt.s32.totalorder %s77_s29, %s77_s29 }
  0x2a   :  { %p2579_p11 = scmp.ne.s32.totalorder %s77_s29, %s2578_s28  ;;  %p2584_p13 = scmp.lt.s32.totalorder %s2578_s28, %s2578_s28 }
  0x2c   :  { %p2585_p0 = por %p2584_p13, %p2583_p12 }
  0x2e   :  { %p2586_p1 = pnand %p2585_p0, %p2579_p11 }
  0x30   :  { %2589 = shalt.err (!%p2586_p1)
}
  0x31   :  { %s2761_s0 = smov 64   ;;  %s2762_s23 = smov 4  }
  0x32   :  { %82 = dma.hbm_to_vmem [thread:$0]  %s3616_s6, 1024, %s77_s29, [#allocation9], %s2761_s0, %s2761_s0, %s2762_s23  }
  0x33   :  { %s2590_s26 = scalar_lea.hbm %s3619_s9, 16 }
  0x34   :  { %p2591_p2 = scmp.ne.s32.totalorder %s3619_s9, %s2590_s26  ;;  %p2594_p3 = scmp.lt.u32.totalorder %s2590_s26, %s3619_s9 }
  0x36   :  { %p2596_p4 = pnand %p2594_p3, %p2591_p2 }
  0x38   :  { %2599 = shalt.err (!%p2596_p4)
}
  0x39   :  { %s2600_s21 = scalar_lea.vmem %s102_s19, 16  ;;  %s2604_s22 = scalar_lea.vmem %s102_s19, 32 }
  0x3a   :  { %p2601_p5 = scmp.ne.s32.totalorder %s102_s19, %s2600_s21  ;;  %p2605_p6 = scmp.lt.s32.totalorder %s102_s19, %s102_s19 }
  0x3b   :  { %p2606_p7 = scmp.lt.s32.totalorder %s2604_s22, %s2600_s21 }
  0x3d   :  { %p2607_p8 = por %p2606_p7, %p2605_p6 }
  0x3f   :  { %p2608_p9 = pnand %p2607_p8, %p2601_p5 }
  0x41   :  { %2611 = shalt.err (!%p2608_p9)
}
  0x42   :  { %104 = dma.hbm_to_vmem [thread:$0]  %s3619_s9, 16, %s102_s19, [#allocation12]  }
  0x43   :  { %s2763_s2 = smov [#allocation2]   ;;  %s3639_s17 = sld [smem:[#allocation24_spill]] }
  0x44   :  { %s36_s28 = sshll.u32 %s2763_s2, 4  ;;  %s37_s28 = int_to_ptr.vmem [resolvable:$true] %s36_s28 }
  0x49   :  { %s2612_s18 = scalar_lea.hbm %s3639_s17, 2048 }
  0x4a   :  { %p2613_p10 = scmp.ne.s32.totalorder %s3639_s17, %s2612_s18  ;;  %p2616_p11 = scmp.lt.u32.totalorder %s2612_s18, %s3639_s17 }
  0x4c   :  { %p2618_p12 = pnand %p2616_p11, %p2613_p10 }
  0x4e   :  { %2621 = shalt.err (!%p2618_p12)
}
  0x4f   :  { %s2622_s20 = scalar_lea.vmem %s37_s28, 2048  ;;  %p2627_p0 = scmp.lt.s32.totalorder %s37_s28, %s37_s28 }
  0x50   :  { %p2623_p13 = scmp.ne.s32.totalorder %s37_s28, %s2622_s20  ;;  %p2628_p1 = scmp.lt.s32.totalorder %s2622_s20, %s2622_s20 }
  0x52   :  { %p2629_p2 = por %p2628_p1, %p2627_p0 }
  0x54   :  { %p2630_p3 = pnand %p2629_p2, %p2623_p13 }
  0x56   :  { %2633 = shalt.err (!%p2630_p3)
}
  0x57   :  { %s2764_s9 = smov 128   ;;  %s2765_s19 = smov 8  }
  0x58   :  { %42 = dma.hbm_to_vmem [thread:$0]  %s3639_s17, 2048, %s37_s28, [#allocation3], %s2764_s9, %s2764_s9, %s2765_s19  }
  0x59   :  { %s2766_s6 = smov [#allocation7]   ;;  %s2767_s2 = smov [#allocation10]  }
  0x5a   :  { %s62_s29 = sshll.u32 %s2766_s6, 4  ;;  %s91_s24 = sshll.u32 %s2767_s2, 4  ;;  %s63_s29 = int_to_ptr.vmem [resolvable:$true] %s62_s29  ;;  %s92_s24 = int_to_ptr.vmem [resolvable:$true] %s91_s24 }
  0x5b   :  { %s2634_s26 = scalar_lea.hbm %s3614_s4, 1024 }
  0x5c   :  { %p2635_p4 = scmp.ne.s32.totalorder %s3614_s4, %s2634_s26  ;;  %p2638_p5 = scmp.lt.u32.totalorder %s2634_s26, %s3614_s4 }
  0x5e   :  { %p2640_p6 = pnand %p2638_p5, %p2635_p4 }
  0x60   :  { %2643 = shalt.err (!%p2640_p6)
}
  0x61   :  { %s2644_s28 = scalar_lea.vmem %s63_s29, 1024  ;;  %p2649_p8 = scmp.lt.s32.totalorder %s63_s29, %s63_s29 }
  0x62   :  { %p2645_p7 = scmp.ne.s32.totalorder %s63_s29, %s2644_s28  ;;  %p2650_p9 = scmp.lt.s32.totalorder %s2644_s28, %s2644_s28 }
  0x64   :  { %p2651_p10 = por %p2650_p9, %p2649_p8 }
  0x66   :  { %p2652_p11 = pnand %p2651_p10, %p2645_p7 }
  0x68   :  { %2655 = shalt.err (!%p2652_p11)
}
  0x69   :  { %68 = dma.hbm_to_vmem [thread:$0]  %s3614_s4, 1024, %s63_s29, [#allocation6], %s2761_s0, %s2761_s0, %s2762_s23  }
  0x6a   :  { %s2656_s22 = scalar_lea.hbm %s3618_s8, 16 }
  0x6b   :  { %p2657_p12 = scmp.ne.s32.totalorder %s3618_s8, %s2656_s22  ;;  %p2660_p13 = scmp.lt.u32.totalorder %s2656_s22, %s3618_s8 }
  0x6d   :  { %p2662_p0 = pnand %p2660_p13, %p2657_p12 }
  0x6f   :  { %2665 = shalt.err (!%p2662_p0)
}
  0x70   :  { %s2666_s26 = scalar_lea.vmem %s92_s24, 16  ;;  %s2670_s27 = scalar_lea.vmem %s92_s24, 32 }
  0x71   :  { %p2667_p1 = scmp.ne.s32.totalorder %s92_s24, %s2666_s26  ;;  %p2671_p2 = scmp.lt.s32.totalorder %s92_s24, %s92_s24 }
  0x72   :  { %p2672_p3 = scmp.lt.s32.totalorder %s2670_s27, %s2666_s26 }
  0x74   :  { %p2673_p4 = por %p2672_p3, %p2671_p2 }
  0x76   :  { %p2674_p5 = pnand %p2673_p4, %p2667_p1 }
  0x78   :  { %2677 = shalt.err (!%p2674_p5)
}
  0x79   :  { %94 = dma.hbm_to_vmem [thread:$0]  %s3618_s8, 16, %s92_s24, [#allocation9]  }
  0x7a   :  { %s2768_s30 = smov [#allocation13]   ;;  %s2769_s20 = smov [#allocation14]  }
  0x7b   :  { %s114_s1 = sshll.u32 %s2768_s30, 4  ;;  %s132_s28 = sshll.u32 %s2769_s20, 4  ;;  %s115_s1 = int_to_ptr.vmem [resolvable:$true] %s114_s1  ;;  %s2947_s28 = int_to_ptr.vmem [resolvable:$true] %s132_s28 }
  0x7c   :  { %s2678_s19 = scalar_lea.hbm %s3622_s12, 2048 }
  0x7d   :  { %p2679_p6 = scmp.ne.s32.totalorder %s3622_s12, %s2678_s19  ;;  %p2682_p7 = scmp.lt.u32.totalorder %s2678_s19, %s3622_s12 }
  0x7f   :  { %p2684_p8 = pnand %p2682_p7, %p2679_p6 }
  0x81   :  { %2687 = shalt.err (!%p2684_p8)
}
  0x82   :  { %s2688_s8 = scalar_lea.vmem %s115_s1, 2048  ;;  %p2693_p10 = scmp.lt.s32.totalorder %s115_s1, %s115_s1 }
  0x83   :  { %p2689_p9 = scmp.ne.s32.totalorder %s115_s1, %s2688_s8  ;;  %p2694_p11 = scmp.lt.s32.totalorder %s2688_s8, %s2688_s8 }
  0x85   :  { %p2695_p12 = por %p2694_p11, %p2693_p10 }
  0x87   :  { %p2696_p13 = pnand %p2695_p12, %p2689_p9 }
  0x89   :  { %2699 = shalt.err (!%p2696_p13)
}
  0x8a   :  { %120 = dma.hbm_to_vmem [thread:$0]  %s3622_s12, 2048, %s115_s1, [#allocation12], %s2761_s0, %s2761_s0, %s2762_s23  }
  0x8b   :  { %s2700_s27 = scalar_lea.hbm %s3626_s16, 1024 }
  0x8c   :  { %p2701_p0 = scmp.ne.s32.totalorder %s3626_s16, %s2700_s27  ;;  %p2704_p1 = scmp.lt.u32.totalorder %s2700_s27, %s3626_s16 }
  0x8e   :  { %p2706_p2 = pnand %p2704_p1, %p2701_p0 }
  0x90   :  { %2709 = shalt.err (!%p2706_p2)
}
  0x91   :  { %s2710_s17 = scalar_lea.vmem %s2947_s28, 1024  ;;  %p2715_p4 = scmp.lt.s32.totalorder %s2947_s28, %s2947_s28 }
  0x92   :  { %p2711_p3 = scmp.ne.s32.totalorder %s2947_s28, %s2710_s17  ;;  %p2716_p5 = scmp.lt.s32.totalorder %s2710_s17, %s2710_s17 }
  0x94   :  { %p2717_p6 = por %p2716_p5, %p2715_p4 }
  0x96   :  { %p2718_p7 = pnand %p2717_p6, %p2711_p3 }
  0x98   :  { %2721 = shalt.err (!%p2718_p7)
}
  0x99   :  { %138 = dma.hbm_to_vmem [thread:$0]  %s3626_s16, 1024, %s2947_s28, [#allocation15], %s2761_s0, %s2761_s0, %s2762_s23  }
  0x9a   :  { %2744 = dma.done.wait [#allocation3], 2048  }
  0x9b   :  { %2745 = vsyncadd [#allocation3], 4294965248 }
  0x9c   :  { %2746 = dma.done.wait [#allocation6], 3584  }
  0x9d   :  { %2747 = vsyncadd [#allocation6], 4294963712 }
  0x9e   :  { %2748 = dma.done.wait [#allocation9], 1040  }
  0x9f   :  { %2749 = vsyncadd [#allocation9], 4294966256 }
  0xa0   :  { %2750 = dma.done.wait [#allocation12], 2064  }
  0xa1   :  { %2751 = vsyncadd [#allocation12], 4294965232 }
  0xa2   :  { %2752 = dma.done.wait [#allocation15], 1024  }
  0xa3   :  { %2753 = vsyncadd [#allocation15], 4294966272  ;;  %v2770_v0 = vmov 0   ;;  %v2442_v1 = vld [vmem:[#allocation5 + $0x4] ss:$20 sps:$4 sm:$0xff]   ;;  %s3640_s23 = sld [smem:[#allocation23_spill]]  ;;  %v714_v36 = vlaneseq }
  0xa4   :  { %407 = vmatprep.mubr.bf16.mxu0 %v2770_v0  ;;  %520 = vmatprep.mubr.bf16.mxu1 %v2770_v0  ;;  %v2444_v2 = vld [vmem:[#allocation5 + $0xc] ss:$20 sps:$4 sm:$0xff]   ;;  %v2447_v4 = vld [vmem:[#allocation5 + $0x8] ss:$20 sps:$4 sm:$0xff]   ;;  %v2453_v8 = vld [vmem:[#allocation5 + $0x30] ss:$20 sps:$4 sm:$0xff]  }
  0xa5   :  { %375 = vmatprep.subr.bf16.mxu0 %v2442_v1  ;;  %v2446_v3 = vld [vmem:[#allocation5] ss:$20 sps:$4 sm:$0xff]   ;;  %488 = vmatprep.subr.bf16.mxu1 %v2444_v2  ;;  %v2452_v7 = vld [vmem:[#allocation5 + $0x28] ss:$20 sps:$4 sm:$0xff]   ;;  %v2458_v11 = vld [vmem:[#allocation5 + $0x50] ss:$20 sps:$4 sm:$0xff]  }
  0xa6   :  { %v2448_v5 = vld [vmem:[#allocation5 + $0x2c] ss:$20 sps:$4 sm:$0xff]   ;;  %376 = vmatpush1.bf16.msra.mxu0 %v2446_v3  ;;  %489 = vmatpush1.bf16.msra.mxu1 %v2447_v4  ;;  %v2450_v6 = vld [vmem:[#allocation5 + $0x34] ss:$20 sps:$4 sm:$0xff]   ;;  %v2456_v10 = vld [vmem:[#allocation5 + $0x5c] ss:$20 sps:$4 sm:$0xff]  }
  0xa7   :  { %377 = vmatprep.subr.bf16.mxu0 %v2448_v5  ;;  %490 = vmatprep.subr.bf16.mxu1 %v2450_v6  ;;  %v2454_v9 = vld [vmem:[#allocation5 + $0x54] ss:$20 sps:$4 sm:$0xff]   ;;  %v2459_v12 = vld [vmem:[#allocation5 + $0x58] ss:$20 sps:$4 sm:$0xff]   ;;  %v2460_v13 = vld [vmem:[#allocation5 + $0x7c] ss:$20 sps:$4 sm:$0xff]  }
  0xa8   :  { %v2462_v14 = vld [vmem:[#allocation5 + $0x84] ss:$20 sps:$4 sm:$0xff]   ;;  %v2465_v16 = vld [vmem:[#allocation5 + $0x80] ss:$20 sps:$4 sm:$0xff]   ;;  %vm350_vm0 = vcmask 523264   ;;  %v2771_v30 = vmov 0.0  }
  0xa9   :  { %v2464_v15 = vld [vmem:[#allocation5 + $0x78] ss:$20 sps:$4 sm:$0xff]   ;;  %v2467_v17 = vld [vmem:[#allocation5 + $0x10] ss:$20 sps:$4 sm:$0xff]   ;;  %v2473_v20 = vld [vmem:[#allocation5 + $0x60] ss:$20 sps:$4 sm:$0xff]  }
  0xaa   :  { %378 = vmatpush1.bf16.msra.mxu0 %v2452_v7  ;;  %491 = vmatpush1.bf16.msra.mxu1 %v2453_v8  ;;  %v2466_v18 = vld [vmem:[%s3640_s23] sm:$0xff]   ;;  %v2470_v19 = vld [vmem:[#allocation5 + $0x38] ss:$20 sps:$4 sm:$0xff]   ;;  %v2476_v22 = vld [vmem:[#allocation5 + $0x88] ss:$20 sps:$4 sm:$0xff]   ;;  %vm2772_vm1 = vmmov 0  }
  0xab   :  { %379 = vmatprep.subr.bf16.mxu0 %v2454_v9  ;;  %492 = vmatprep.subr.bf16.mxu1 %v2456_v10  ;;  %v2468_v21 = vld [vmem:[%s3640_s23 + $0x8] sm:$0xff]   ;;  %v2469_v23 = vld [vmem:[%s3640_s23 + $0x10] sm:$0xff]   ;;  %v2471_v24 = vld [vmem:[%s3640_s23 + $0x18] sm:$0xff]   ;;  %v3060_v38 = vshrl.u32 %v714_v36, 7  ;;  %vm1070_vm6 = vcmask 1041409   ;;  %vm1072_vm7 = vcmask 1042434  }
  0xac   :  { %v2472_v25 = vld [vmem:[%s3640_s23 + $0x20] sm:$0xff]   ;;  %v2474_v26 = vld [vmem:[%s3640_s23 + $0x28] sm:$0xff]   ;;  %v2475_v27 = vld [vmem:[%s3640_s23 + $0x30] sm:$0xff]   ;;  %vm1074_vm8 = vcmask 1043459   ;;  %vm1076_vm9 = vcmask 1044484   ;;  %vm1078_vm10 = vcmask 1045509  }
  0xad   :  { %v2477_v28 = vld [vmem:[%s3640_s23 + $0x38] sm:$0xff]   ;;  %v2478_v29 = vld [vmem:[#allocation7] sm:$0xff]   ;;  %v2479_v31 = vld [vmem:[#allocation7 + $0x8] sm:$0xff]   ;;  %vm765_vm2 = vcmp.lt.s32.totalorder %v3060_v38, 6  ;;  %vm716_vm3 = vcmp.lt.s32.totalorder %v3060_v38, 7  ;;  %vm814_vm4 = vcmp.lt.s32.totalorder %v3060_v38, 5 }
  0xae   :  { %380 = vmatpush1.bf16.msra.mxu0 %v2458_v11  ;;  %493 = vmatpush1.bf16.msra.mxu1 %v2459_v12  ;;  %v2480_v32 = vld [vmem:[#allocation7 + $0x10] sm:$0xff]   ;;  %v2481_v33 = vld [vmem:[#allocation7 + $0x18] sm:$0xff]   ;;  %v2482_v34 = vld [vmem:[#allocation7 + $0x20] sm:$0xff]   ;;  %vm863_vm5 = vcmp.lt.s32.totalorder %v3060_v38, 4  ;;  %vm1080_vm11 = vcmask 1046534   ;;  %vm1082_vm12 = vcmask 1047559  }
  0xaf   :  { %381 = vmatprep.subr.bf16.mxu0 %v2460_v13  ;;  %494 = vmatprep.subr.bf16.mxu1 %v2462_v14  ;;  %v2483_v35 = vld [vmem:[#allocation7 + $0x28] sm:$0xff]   ;;  %v2484_v37 = vld [vmem:[#allocation7 + $0x30] sm:$0xff]   ;;  %v2485_v39 = vld [vmem:[#allocation7 + $0x38] sm:$0xff]   ;;  %s3641_s6 = sld [smem:[#allocation26_spill]]  ;;  %s2773_s2 = smov [#allocation16]  }
  0xb0   :  { %v2486_v57 = vld [vmem:[#allocation8] sm:$0xff]   ;;  %v2487_v61 = vld [vmem:[#allocation8 + $0x8] sm:$0xff]   ;;  %s2149_s8 = sshll.u32 %s2773_s2, 4  ;;  %s2150_s8 = int_to_ptr.vmem [resolvable:$true] %s2149_s8 }
  0xb1   :  { %s2722_s24 = scalar_lea.vmem %s2150_s8, 128  ;;  %p2727_p9 = scmp.lt.s32.totalorder %s2150_s8, %s2150_s8 }
  0xb2   :  { %382 = vmatpush1.bf16.msra.mxu0 %v2464_v15  ;;  %495 = vmatpush1.bf16.msra.mxu1 %v2465_v16  ;;  %v2488_v16 = vld [vmem:[#allocation8 + $0x10] sm:$0xff]   ;;  %p2723_p8 = scmp.ne.s32.totalorder %s2150_s8, %s2722_s24  ;;  %p2728_p10 = scmp.lt.s32.totalorder %s2722_s24, %s2722_s24 }
  0xb3   :  { %2340 = vmatprep.subr.bf16.mxu0 %v2467_v17  ;;  %2364 = vmatprep.subr.bf16.mxu1 %v2771_v30 }
  0xb4   :  { %p2729_p11 = por %p2728_p10, %p2727_p9 }
  0xb5   :  { %2190 = vmatmul.mubr.msk.bf16.vlgmr.msra.gmra.mrb[0].mxu0 %vm350_vm0, %v2466_v18  ;;  %2198 = vmatmul.mubr.msk.bf16.vlgmr.msra.gmra.mrb[0].mxu1 %vm350_vm0, %v2466_v18 }
  0xb6   :  { %2341 = vmatpush3.bf16.msra.mxu0 %v2467_v17  ;;  %417 = vmatprep.mubr.bf16.mxu0 %v2770_v0  ;;  %p2730_p12 = pnand %p2729_p11, %p2723_p8 }
  0xb7   :  { %530 = vmatprep.mubr.bf16.mxu1 %v2770_v0  ;;  %2342 = vmatprep.subr.bf16.mxu0 %v2470_v19 }
  0xb8   :  { %2365 = vmatpush3.bf16.msra.mxu1 %v2478_v29 }
  0xb9   :  { %2366 = vmatprep.subr.bf16.mxu1 %v2771_v30 }
  0xba   :  { %2343 = vmatpush3.bf16.msra.mxu0 %v2470_v19 }
  0xbb   :  { %2344 = vmatprep.subr.bf16.mxu0 %v2473_v20 }
  0xbc   :  { %2367 = vmatpush3.bf16.msra.mxu1 %v2479_v31 }
  0xbd   :  { %2191 = vmatmul.mubr.msk.bf16.gmra.mrb[4].mxu0 %vm350_vm0, %v2468_v21  ;;  %2199 = vmatmul.mubr.msk.bf16.gmra.mrb[4].mxu1 %vm350_vm0, %v2468_v21 }
  0xbe   :  { %427 = vmatprep.mubr.bf16.mxu0 %v2770_v0  ;;  %540 = vmatprep.mubr.bf16.mxu1 %v2770_v0 }
  0xbf   :  { %2345 = vmatpush3.bf16.msra.mxu0 %v2473_v20  ;;  %2368 = vmatprep.subr.bf16.mxu1 %v2771_v30 }
  0xc0   :  { %2346 = vmatprep.subr.bf16.mxu0 %v2476_v22  ;;  %2369 = vmatpush3.bf16.msra.mxu1 %v2480_v32 }
  0xc1   :  { %2370 = vmatprep.subr.bf16.mxu1 %v2771_v30 }
  0xc3   :  { %2347 = vmatpush3.bf16.msra.mxu0 %v2476_v22 }
  0xc4   :  { %2384 = vmatprep.subr.bf16.mxu0 %v2771_v30  ;;  %2371 = vmatpush3.bf16.msra.mxu1 %v2481_v33 }
  0xc5   :  { %2192 = vmatmul.mubr.msk.bf16.gmra.mrb[8].mxu0 %vm350_vm0, %v2469_v23  ;;  %2200 = vmatmul.mubr.msk.bf16.gmra.mrb[8].mxu1 %vm350_vm0, %v2469_v23 }
  0xc6   :  { %437 = vmatprep.mubr.bf16.mxu0 %v2770_v0  ;;  %550 = vmatprep.mubr.bf16.mxu1 %v2770_v0 }
  0xc7   :  { %2372 = vmatprep.subr.bf16.mxu1 %v2771_v30 }
  0xc8   :  { %2373 = vmatpush3.bf16.msra.mxu1 %v2482_v34 }
  0xc9   :  { %2374 = vmatprep.subr.bf16.mxu1 %v2771_v30 }
  0xcc   :  { %2375 = vmatpush3.bf16.msra.mxu1 %v2483_v35 }
  0xcd   :  { %2193 = vmatmul.mubr.msk.bf16.gmra.mrb[12].mxu0 %vm350_vm0, %v2471_v24  ;;  %2201 = vmatmul.mubr.msk.bf16.gmra.mrb[12].mxu1 %vm350_vm0, %v2471_v24 }
  0xce   :  { %447 = vmatprep.mubr.bf16.mxu0 %v2770_v0  ;;  %560 = vmatprep.mubr.bf16.mxu1 %v2770_v0 }
  0xcf   :  { %2376 = vmatprep.subr.bf16.mxu1 %v2771_v30 }
  0xd0   :  { %2377 = vmatpush3.bf16.msra.mxu1 %v2484_v37 }
  0xd1   :  { %2378 = vmatprep.subr.bf16.mxu1 %v2771_v30 }
  0xd4   :  { %2379 = vmatpush3.bf16.msra.mxu1 %v2485_v39 }
  0xd5   :  { %2194 = vmatmul.mubr.msk.bf16.gmra.mrb[16].mxu0 %vm350_vm0, %v2472_v25  ;;  %2202 = vmatmul.mubr.msk.bf16.gmra.mrb[16].mxu1 %vm350_vm0, %v2472_v25 }
  0xd6   :  { %457 = vmatprep.mubr.bf16.mxu0 %v2770_v0  ;;  %570 = vmatprep.mubr.bf16.mxu1 %v2770_v0 }
  0xdd   :  { %2195 = vmatmul.mubr.msk.bf16.gmra.mrb[20].mxu0 %vm350_vm0, %v2474_v26  ;;  %2203 = vmatmul.mubr.msk.bf16.gmra.mrb[20].mxu1 %vm350_vm0, %v2474_v26 }
  0xde   :  { %467 = vmatprep.mubr.bf16.mxu0 %v2770_v0  ;;  %580 = vmatprep.mubr.bf16.mxu1 %v2770_v0 }
  0xe5   :  { %2196 = vmatmul.mubr.msk.bf16.gmra.mrb[24].mxu0 %vm350_vm0, %v2475_v27  ;;  %2204 = vmatmul.mubr.msk.bf16.gmra.mrb[24].mxu1 %vm350_vm0, %v2475_v27 }
  0xe6   :  { %477 = vmatprep.mubr.bf16.mxu0 %v2770_v0  ;;  %590 = vmatprep.mubr.bf16.mxu1 %v2770_v0 }
  0xed   :  { %2197 = vmatmul.mubr.msk.bf16.gmra.mrb[28].mxu0 %vm350_vm0, %v2477_v28  ;;  %2205 = vmatmul.mubr.msk.bf16.gmra.mrb[28].mxu1 %vm350_vm0, %v2477_v28 }
  0xee   :  { %2348 = vmatprep.mubr.msk.bf16.mxu0 %vm350_vm0, %v2466_v18  ;;  %2380 = vmatprep.mubr.msk.bf16.mxu1 %vm2772_vm1, %v2771_v30 }
  0xf5   :  { %2349 = vmatmul.mubr.msk.bf16.vlgmr.msra.gmra.mrb[32].mxu0 %vm350_vm0, %v2468_v21 }
  0xf6   :  { %2352 = vmatprep.mubr.msk.bf16.mxu0 %vm350_vm0, %v2469_v23  ;;  %2385 = vmatpush3.bf16.msra.mxu0 %v2486_v57 }
  0xf7   :  { %2386 = vmatprep.subr.bf16.mxu0 %v2771_v30 }
  0xfa   :  { %2387 = vmatpush3.bf16.msra.mxu0 %v2487_v61  ;;  %v2491_v61 = vld [vmem:[#allocation8 + $0x28] sm:$0xff]  }
  0xfb   :  { %2388 = vmatprep.subr.bf16.mxu0 %v2771_v30 }
  0xfd   :  { %2353 = vmatmul.mubr.msk.bf16.gmra.mrb[36].mxu0 %vm350_vm0, %v2471_v24 }
  0xfe   :  { %2356 = vmatprep.mubr.msk.bf16.mxu0 %vm350_vm0, %v2472_v25  ;;  %2389 = vmatpush3.bf16.msra.mxu0 %v2488_v16  ;;  %v2489_v25 = vld [vmem:[#allocation8 + $0x18] sm:$0xff]  }
  0xff   :  { %2390 = vmatprep.subr.bf16.mxu0 %v2771_v30 }
 0x102   :  { %2391 = vmatpush3.bf16.msra.mxu0 %v2489_v25 }
 0x103   :  { %2392 = vmatprep.subr.bf16.mxu0 %v2771_v30 }
 0x105   :  { %2357 = vmatmul.mubr.msk.bf16.gmra.mrb[40].mxu0 %vm350_vm0, %v2474_v26 }
 0x106   :  { %2360 = vmatprep.mubr.msk.bf16.mxu0 %vm350_vm0, %v2475_v27 }
 0x10d   :  { %2361 = vmatmul.mubr.msk.bf16.gmra.mrb[44].mxu0 %vm350_vm0, %v2477_v28 }
 0x10e   :  { %2400 = vmatprep.mubr.msk.bf16.mxu0 %vm2772_vm1, %v2771_v30 }
 0x188   :  { %v409_v40 = vpop.f32.mrb[0].mxu0  ;;  %v3062_v41 = vpop.f32.mrb[0].mxu1 }
 0x189   :  { %v3065_v42 = vpop.f32.mrb[1].mxu0  ;;  %v749_v43 = vrot.slane %v3062_v41, 2  ;;  %v3068_v44 = vpop.f32.mrb[1].mxu1 }
 0x18a   :  { %v413_v45 = vpop.f32.mrb[2].mxu0  ;;  %v798_v46 = vrot.slane %v3068_v44, 3  ;;  %v526_v47 = vpop.f32.mrb[2].mxu1  ;;  %v698_v51 = vrot.slane %v3065_v42, 1 }
 0x18b   :  { %v415_v48 = vpop.f32.mrb[3].mxu0  ;;  %v750_v49 = vrot.slane %v526_v47, 2  ;;  %v528_v50 = vpop.f32.mrb[3].mxu1 }
 0x18c   :  { %v699_v52 = vrot.slane %v415_v48, 1  ;;  %v799_v53 = vrot.slane %v528_v50, 3 }
 0x18d   :  { %v780_v54 = vsel %vm765_vm2, %v749_v43, %v750_v49 }
 0x18e   :  { %v731_v55 = vsel %vm716_vm3, %v698_v51, %v699_v52  ;;  %v829_v56 = vsel %vm814_vm4, %v798_v46, %v799_v53 }
 0x18f   :  { %v733_v58 = vadd.f32 %v731_v55, %v409_v40 }
 0x190   :  { %v419_v59 = vpop.f32.mrb[4].mxu0  ;;  %v532_v60 = vpop.f32.mrb[4].mxu1 }
 0x191   :  { %v782_v62 = vadd.f32 %v780_v54, %v733_v58  ;;  %v421_v63 = vpop.f32.mrb[5].mxu0  ;;  %v751_v1 = vrot.slane %v532_v60, 2  ;;  %v534_v2 = vpop.f32.mrb[5].mxu1 }
 0x192   :  { %v700_v3 = vrot.slane %v421_v63, 1  ;;  %v423_v4 = vpop.f32.mrb[6].mxu0  ;;  %v800_v5 = vrot.slane %v534_v2, 3  ;;  %v536_v6 = vpop.f32.mrb[6].mxu1 }
 0x193   :  { %v3088_v7 = vadd.f32 %v829_v56, %v782_v62  ;;  %v425_v8 = vpop.f32.mrb[7].mxu0  ;;  %v779_v9 = vsel %vm765_vm2, %v750_v49, %v751_v1  ;;  %v752_v10 = vrot.slane %v536_v6, 2  ;;  %v538_v11 = vpop.f32.mrb[7].mxu1 }
 0x194   :  { %v730_v12 = vsel %vm716_vm3, %v699_v52, %v700_v3  ;;  %v701_v13 = vrot.slane %v425_v8, 1  ;;  %v828_v14 = vsel %vm814_vm4, %v799_v53, %v800_v5  ;;  %v801_v15 = vrot.slane %v538_v11, 3  ;;  %v2490_v52 = vld [vmem:[#allocation8 + $0x20] sm:$0xff]  }
 0x195   :  { %v734_v17 = vadd.f32 %v730_v12, %v413_v45  ;;  %v778_v18 = vsel %vm765_vm2, %v751_v1, %v752_v10  ;;  %2393 = vmatpush3.bf16.msra.mxu0 %v2490_v52 }
 0x196   :  { %v729_v19 = vsel %vm716_vm3, %v700_v3, %v701_v13  ;;  %v827_v20 = vsel %vm814_vm4, %v800_v5, %v801_v15  ;;  %2394 = vmatprep.subr.bf16.mxu0 %v2771_v30 }
 0x197   :  { %v735_v21 = vadd.f32 %v729_v19, %v419_v59  ;;  %v783_v22 = vadd.f32 %v779_v9, %v734_v17 }
 0x198   :  { %v429_v23 = vpop.f32.mrb[8].mxu0  ;;  %v542_v24 = vpop.f32.mrb[8].mxu1 }
 0x199   :  { %v3103_v26 = vadd.f32 %v828_v14, %v783_v22  ;;  %v784_v27 = vadd.f32 %v778_v18, %v735_v21  ;;  %v431_v28 = vpop.f32.mrb[9].mxu0  ;;  %v753_v29 = vrot.slane %v542_v24, 2  ;;  %v544_v31 = vpop.f32.mrb[9].mxu1  ;;  %2395 = vmatpush3.bf16.msra.mxu0 %v2491_v61  ;;  %v2492_v18 = vld [vmem:[#allocation8 + $0x30] sm:$0xff]  }
 0x19a   :  { %v702_v32 = vrot.slane %v431_v28, 1  ;;  %v433_v33 = vpop.f32.mrb[10].mxu0  ;;  %v802_v34 = vrot.slane %v544_v31, 3  ;;  %v546_v35 = vpop.f32.mrb[10].mxu1  ;;  %2396 = vmatprep.subr.bf16.mxu0 %v2771_v30 }
 0x19b   :  { %v3106_v36 = vadd.f32 %v827_v20, %v784_v27  ;;  %v435_v37 = vpop.f32.mrb[11].mxu0  ;;  %v777_v39 = vsel %vm765_vm2, %v752_v10, %v753_v29  ;;  %v754_v40 = vrot.slane %v546_v35, 2  ;;  %v548_v45 = vpop.f32.mrb[11].mxu1 }
 0x19c   :  { %v728_v47 = vsel %vm716_vm3, %v701_v13, %v702_v32  ;;  %v703_v48 = vrot.slane %v435_v37, 1  ;;  %v826_v49 = vsel %vm814_vm4, %v801_v15, %v802_v34  ;;  %v803_v50 = vrot.slane %v548_v45, 3 }
 0x19d   :  { %v736_v53 = vadd.f32 %v728_v47, %v423_v4  ;;  %v776_v54 = vsel %vm765_vm2, %v753_v29, %v754_v40  ;;  %2397 = vmatpush3.bf16.msra.mxu0 %v2492_v18 }
 0x19e   :  { %v727_v55 = vsel %vm716_vm3, %v702_v32, %v703_v48  ;;  %v825_v56 = vsel %vm814_vm4, %v802_v34, %v803_v50  ;;  %2398 = vmatprep.subr.bf16.mxu0 %v2771_v30 }
 0x19f   :  { %v737_v57 = vadd.f32 %v727_v55, %v429_v23  ;;  %v785_v58 = vadd.f32 %v777_v39, %v736_v53 }
 0x1a0   :  { %v439_v59 = vpop.f32.mrb[12].mxu0  ;;  %v552_v60 = vpop.f32.mrb[12].mxu1 }
 0x1a1   :  { %v3121_v62 = vadd.f32 %v826_v49, %v785_v58  ;;  %v786_v63 = vadd.f32 %v776_v54, %v737_v57  ;;  %v441_v1 = vpop.f32.mrb[13].mxu0  ;;  %v755_v2 = vrot.slane %v552_v60, 2  ;;  %v554_v3 = vpop.f32.mrb[13].mxu1 }
 0x1a2   :  { %v704_v4 = vrot.slane %v441_v1, 1  ;;  %v443_v5 = vpop.f32.mrb[14].mxu0  ;;  %v804_v6 = vrot.slane %v554_v3, 3  ;;  %v556_v8 = vpop.f32.mrb[14].mxu1 }
 0x1a3   :  { %v3124_v9 = vadd.f32 %v825_v56, %v786_v63  ;;  %v445_v10 = vpop.f32.mrb[15].mxu0  ;;  %v775_v11 = vsel %vm765_vm2, %v754_v40, %v755_v2  ;;  %v756_v12 = vrot.slane %v556_v8, 2  ;;  %v558_v13 = vpop.f32.mrb[15].mxu1 }
 0x1a4   :  { %v726_v14 = vsel %vm716_vm3, %v703_v48, %v704_v4  ;;  %v705_v15 = vrot.slane %v445_v10, 1  ;;  %v824_v16 = vsel %vm814_vm4, %v803_v50, %v804_v6  ;;  %v805_v17 = vrot.slane %v558_v13, 3 }
 0x1a5   :  { %v738_v19 = vadd.f32 %v726_v14, %v433_v33  ;;  %v774_v20 = vsel %vm765_vm2, %v755_v2, %v756_v12 }
 0x1a6   :  { %v725_v21 = vsel %vm716_vm3, %v704_v4, %v705_v15  ;;  %v823_v22 = vsel %vm814_vm4, %v804_v6, %v805_v17 }
 0x1a7   :  { %v739_v23 = vadd.f32 %v725_v21, %v439_v59  ;;  %v787_v24 = vadd.f32 %v775_v11, %v738_v19 }
 0x1a8   :  { %v449_v25 = vpop.f32.mrb[16].mxu0  ;;  %v562_v27 = vpop.f32.mrb[16].mxu1 }
 0x1a9   :  { %v3139_v28 = vadd.f32 %v824_v16, %v787_v24  ;;  %v788_v29 = vadd.f32 %v774_v20, %v739_v23  ;;  %v451_v31 = vpop.f32.mrb[17].mxu0  ;;  %v757_v32 = vrot.slane %v562_v27, 2  ;;  %v564_v33 = vpop.f32.mrb[17].mxu1 }
 0x1aa   :  { %v706_v34 = vrot.slane %v451_v31, 1  ;;  %v453_v35 = vpop.f32.mrb[18].mxu0  ;;  %v806_v37 = vrot.slane %v564_v33, 3  ;;  %v566_v39 = vpop.f32.mrb[18].mxu1 }
 0x1ab   :  { %v3142_v40 = vadd.f32 %v823_v22, %v788_v29  ;;  %v455_v45 = vpop.f32.mrb[19].mxu0  ;;  %v773_v47 = vsel %vm765_vm2, %v756_v12, %v757_v32  ;;  %v758_v48 = vrot.slane %v566_v39, 2  ;;  %v568_v49 = vpop.f32.mrb[19].mxu1 }
 0x1ac   :  { %v724_v50 = vsel %vm716_vm3, %v705_v15, %v706_v34  ;;  %v707_v52 = vrot.slane %v455_v45, 1  ;;  %v822_v53 = vsel %vm814_vm4, %v805_v17, %v806_v37  ;;  %v807_v54 = vrot.slane %v568_v49, 3 }
 0x1ad   :  { %v740_v55 = vadd.f32 %v724_v50, %v443_v5  ;;  %v772_v56 = vsel %vm765_vm2, %v757_v32, %v758_v48 }
 0x1ae   :  { %v723_v57 = vsel %vm716_vm3, %v706_v34, %v707_v52  ;;  %v821_v58 = vsel %vm814_vm4, %v806_v37, %v807_v54 }
 0x1af   :  { %v741_v59 = vadd.f32 %v723_v57, %v449_v25  ;;  %v789_v60 = vadd.f32 %v773_v47, %v740_v55 }
 0x1b0   :  { %v459_v61 = vpop.f32.mrb[20].mxu0  ;;  %v572_v63 = vpop.f32.mrb[20].mxu1 }
 0x1b1   :  { %v3156_v1 = vadd.f32 %v822_v53, %v789_v60  ;;  %v790_v2 = vadd.f32 %v772_v56, %v741_v59  ;;  %v461_v3 = vpop.f32.mrb[21].mxu0  ;;  %v759_v4 = vrot.slane %v572_v63, 2  ;;  %v574_v6 = vpop.f32.mrb[21].mxu1 }
 0x1b2   :  { %v708_v5 = vrot.slane %v461_v3, 1  ;;  %v463_v8 = vpop.f32.mrb[22].mxu0  ;;  %v808_v10 = vrot.slane %v574_v6, 3  ;;  %v576_v11 = vpop.f32.mrb[22].mxu1 }
 0x1b3   :  { %v3158_v12 = vadd.f32 %v821_v58, %v790_v2  ;;  %v465_v13 = vpop.f32.mrb[23].mxu0  ;;  %v771_v14 = vsel %vm765_vm2, %v758_v48, %v759_v4  ;;  %v760_v15 = vrot.slane %v576_v11, 2  ;;  %v578_v16 = vpop.f32.mrb[23].mxu1 }
 0x1b4   :  { %v722_v17 = vsel %vm716_vm3, %v707_v52, %v708_v5  ;;  %v709_v18 = vrot.slane %v465_v13, 1  ;;  %v820_v19 = vsel %vm814_vm4, %v807_v54, %v808_v10  ;;  %v809_v20 = vrot.slane %v578_v16, 3 }
 0x1b5   :  { %v742_v21 = vadd.f32 %v722_v17, %v453_v35  ;;  %v770_v22 = vsel %vm765_vm2, %v759_v4, %v760_v15 }
 0x1b6   :  { %v721_v23 = vsel %vm716_vm3, %v708_v5, %v709_v18  ;;  %v819_v24 = vsel %vm814_vm4, %v808_v10, %v809_v20 }
 0x1b7   :  { %v743_v25 = vadd.f32 %v721_v23, %v459_v61  ;;  %v791_v27 = vadd.f32 %v771_v14, %v742_v21 }
 0x1b8   :  { %v469_v29 = vpop.f32.mrb[24].mxu0  ;;  %v582_v31 = vpop.f32.mrb[24].mxu1 }
 0x1b9   :  { %v3172_v32 = vadd.f32 %v820_v19, %v791_v27  ;;  %v792_v33 = vadd.f32 %v770_v22, %v743_v25  ;;  %v471_v34 = vpop.f32.mrb[25].mxu0  ;;  %v761_v37 = vrot.slane %v582_v31, 2  ;;  %v584_v39 = vpop.f32.mrb[25].mxu1 }
 0x1ba   :  { %v710_v35 = vrot.slane %v471_v34, 1  ;;  %v473_v45 = vpop.f32.mrb[26].mxu0  ;;  %v810_v47 = vrot.slane %v584_v39, 3  ;;  %v586_v48 = vpop.f32.mrb[26].mxu1 }
 0x1bb   :  { %v3174_v49 = vadd.f32 %v819_v24, %v792_v33  ;;  %v475_v50 = vpop.f32.mrb[27].mxu0  ;;  %v769_v52 = vsel %vm765_vm2, %v760_v15, %v761_v37  ;;  %v762_v53 = vrot.slane %v586_v48, 2  ;;  %v588_v54 = vpop.f32.mrb[27].mxu1 }
 0x1bc   :  { %v720_v55 = vsel %vm716_vm3, %v709_v18, %v710_v35  ;;  %v711_v56 = vrot.slane %v475_v50, 1  ;;  %v818_v57 = vsel %vm814_vm4, %v809_v20, %v810_v47  ;;  %v811_v58 = vrot.slane %v588_v54, 3 }
 0x1bd   :  { %v744_v59 = vadd.f32 %v720_v55, %v463_v8  ;;  %v768_v60 = vsel %vm765_vm2, %v761_v37, %v762_v53 }
 0x1be   :  { %v719_v61 = vsel %vm716_vm3, %v710_v35, %v711_v56  ;;  %v817_v63 = vsel %vm814_vm4, %v810_v47, %v811_v58 }
 0x1bf   :  { %v745_v2 = vadd.f32 %v719_v61, %v469_v29  ;;  %v793_v3 = vadd.f32 %v769_v52, %v744_v59 }
 0x1c0   :  { %v479_v4 = vpop.f32.mrb[28].mxu0  ;;  %v592_v6 = vpop.f32.mrb[28].mxu1 }
 0x1c1   :  { %v3188_v5 = vadd.f32 %v818_v57, %v793_v3  ;;  %v794_v10 = vadd.f32 %v768_v60, %v745_v2  ;;  %v763_v11 = vrot.slane %v592_v6, 2  ;;  %v481_v13 = vpop.f32.mrb[29].mxu0  ;;  %v594_v14 = vpop.f32.mrb[29].mxu1  ;;  %v3232_v60 = vld [vmem:[%s3613_s3] ss:$0 sm:$0xff] }
 0x1c2   :  { %v712_v8 = vrot.slane %v481_v13, 1  ;;  %v812_v15 = vrot.slane %v594_v14, 3  ;;  %v483_v16 = vpop.f32.mrb[30].mxu0  ;;  %v596_v17 = vpop.f32.mrb[30].mxu1  ;;  %v935_v13 = vld [vmem:[#allocation2] sm:$0xff]  ;;  %v936_v14 = vld [vmem:[#allocation2 + $0x8] sm:$0xff] }
 0x1c3   :  { %v3190_v18 = vadd.f32 %v817_v63, %v794_v10  ;;  %v767_v19 = vsel %vm765_vm2, %v762_v53, %v763_v11  ;;  %v764_v20 = vrot.slane %v596_v17, 2  ;;  %v485_v21 = vpop.f32.mrb[31].mxu0  ;;  %v598_v22 = vpop.f32.mrb[31].mxu1 }
 0x1c4   :  { %v718_v23 = vsel %vm716_vm3, %v711_v56, %v712_v8  ;;  %v816_v24 = vsel %vm814_vm4, %v811_v58, %v812_v15  ;;  %v713_v25 = vrot.slane %v485_v21, 1  ;;  %v813_v27 = vrot.slane %v598_v22, 3 }
 0x1c5   :  { %v746_v29 = vadd.f32 %v718_v23, %v473_v45  ;;  %v766_v31 = vsel %vm765_vm2, %v763_v11, %v764_v20  ;;  %v781_v33 = vsel %vm765_vm2, %v764_v20, %v749_v43 }
 0x1c6   :  { %v717_v34 = vsel %vm716_vm3, %v712_v8, %v713_v25  ;;  %v732_v37 = vsel %vm716_vm3, %v713_v25, %v698_v51  ;;  %v815_v39 = vsel %vm814_vm4, %v812_v15, %v813_v27  ;;  %v830_v35 = vsel %vm814_vm4, %v813_v27, %v798_v46 }
 0x1c7   :  { %v795_v41 = vadd.f32 %v767_v19, %v746_v29  ;;  %v747_v45 = vadd.f32 %v717_v34, %v479_v4  ;;  %v748_v47 = vadd.f32 %v732_v37, %v483_v16  ;;  %v937_v34 = vld [vmem:[#allocation2 + $0x10] sm:$0xff] }
 0x1c8   :  { %v2350_v43 = vpop.f32.mrb[32].mxu0 }
 0x1c9   :  { %v3216_v48 = vadd.f32 %v816_v24, %v795_v41  ;;  %v796_v50 = vadd.f32 %v766_v31, %v747_v45  ;;  %v797_v52 = vadd.f32 %v781_v33, %v748_v47  ;;  %v3218_v42 = vpop.f32.mrb[33].mxu0  ;;  %v849_v44 = vrot.slane %v2350_v43, 4  ;;  %v938_v41 = vld [vmem:[#allocation2 + $0x18] sm:$0xff] }
 0x1ca   :  { %v2351_v53 = vpop.f32.mrb[34].mxu0  ;;  %v847_v56 = vrot.slane %v3218_v42, 4 }
 0x1cb   :  { %v3221_v51 = vadd.f32 %v815_v39, %v796_v50  ;;  %v3223_v54 = vadd.f32 %v830_v35, %v797_v52  ;;  %v850_v55 = vrot.slane %v2351_v53, 4  ;;  %v638_v46 = vpop.f32.mrb[35].mxu0  ;;  %v939_v53 = vld [vmem:[#allocation2 + $0x20] sm:$0xff] }
 0x1cc   :  { %v848_v57 = vrot.slane %v638_v46, 4 }
 0x1cd   :  { %v876_v58 = vsel %vm863_vm5, %v849_v44, %v850_v55 }
 0x1ce   :  { %v882_v59 = vadd.f32 %v876_v58, %v3106_v36  ;;  %v877_v61 = vsel %vm863_vm5, %v848_v57, %v849_v44  ;;  %v878_v63 = vsel %vm863_vm5, %v847_v56, %v848_v57  ;;  %v940_v44 = vld [vmem:[#allocation2 + $0x28] sm:$0xff] }
 0x1cf   :  { %v880_v2 = vadd.f32 %v878_v63, %v3088_v7  ;;  %v881_v3 = vadd.f32 %v877_v61, %v3103_v26 }
 0x1d0   :  { %v2354_v4 = vpop.f32.mrb[36].mxu0  ;;  %v905_v11 = vadd.f32 %v3232_v60, %v882_v59 }
 0x1d1   :  { %v903_v36 = vadd.f32 %v3232_v60, %v880_v2  ;;  %v904_v6 = vadd.f32 %v3232_v60, %v881_v3  ;;  %v651_v10 = vpop.f32.mrb[37].mxu0  ;;  %v853_v19 = vrot.slane %v2354_v4, 4 }
 0x1d2   :  { %v851_v8 = vrot.slane %v651_v10, 4  ;;  %v2355_v15 = vpop.f32.mrb[38].mxu0  ;;  %v921_v27 = vmax.f32 %v905_v11, 0.0 }
 0x1d3   :  { %v919_v16 = vmax.f32 %v903_v36, 0.0  ;;  %v920_v17 = vmax.f32 %v904_v6, 0.0  ;;  %v854_v20 = vrot.slane %v2355_v15, 4  ;;  %v654_v21 = vpop.f32.mrb[39].mxu0 }
 0x1d4   :  { %v875_v7 = vsel %vm863_vm5, %v850_v55, %v851_v8  ;;  %v852_v26 = vrot.slane %v654_v21, 4  ;;  %v953_v52 = vmul.f32 %v937_v34, %v921_v27 }
 0x1d5   :  { %v951_v22 = vmul.f32 %v935_v13, %v919_v16  ;;  %v952_v23 = vmul.f32 %v936_v14, %v920_v17  ;;  %v883_v24 = vadd.f32 %v875_v7, %v3121_v62  ;;  %v872_v25 = vsel %vm863_vm5, %v853_v19, %v854_v20 }
 0x1d6   :  { %v886_v29 = vadd.f32 %v872_v25, %v3142_v40  ;;  %v873_v31 = vsel %vm863_vm5, %v852_v26, %v853_v19  ;;  %v874_v33 = vsel %vm863_vm5, %v851_v8, %v852_v26 }
 0x1d7   :  { %v967_v37 = vmax.f32 %v951_v22, %v952_v23  ;;  %v906_v39 = vadd.f32 %v3232_v60, %v883_v24  ;;  %v884_v35 = vadd.f32 %v874_v33, %v3124_v9  ;;  %v885_v62 = vadd.f32 %v873_v31, %v3139_v28  ;;  %v942_v24 = vld [vmem:[#allocation2 + $0x38] sm:$0xff] }
 0x1d8   :  { %v2358_v45 = vpop.f32.mrb[40].mxu0  ;;  %v909_v58 = vadd.f32 %v3232_v60, %v886_v29 }
 0x1d9   :  { %v922_v47 = vmax.f32 %v906_v39, 0.0  ;;  %v907_v43 = vadd.f32 %v3232_v60, %v884_v35  ;;  %v908_v40 = vadd.f32 %v3232_v60, %v885_v62  ;;  %v667_v50 = vpop.f32.mrb[41].mxu0  ;;  %v857_v28 = vrot.slane %v2358_v45, 4  ;;  %v943_v39 = vld [vmem:[#allocation2 + $0x40] sm:$0xff]  ;;  %v944_v35 = vld [vmem:[#allocation2 + $0x48] sm:$0xff] }
 0x1da   :  { %v855_v55 = vrot.slane %v667_v50, 4  ;;  %v2359_v46 = vpop.f32.mrb[42].mxu0  ;;  %v968_v4 = vrot.slane %v967_v37, 4  ;;  %v925_v16 = vmax.f32 %v909_v58, 0.0 }
 0x1db   :  { %v954_v57 = vmul.f32 %v938_v41, %v922_v47  ;;  %v923_v59 = vmax.f32 %v907_v43, 0.0  ;;  %v924_v9 = vmax.f32 %v908_v40, 0.0  ;;  %v670_v61 = vpop.f32.mrb[43].mxu0  ;;  %v858_v2 = vrot.slane %v2359_v46, 4 }
 0x1dc   :  { %v871_v63 = vsel %vm863_vm5, %v854_v20, %v855_v55  ;;  %v856_v3 = vrot.slane %v670_v61, 4  ;;  %v941_v20 = vld [vmem:[#allocation2 + $0x30] sm:$0xff]  ;;  %v969_v34 = vmax.f32 %v967_v37, %v968_v4 }
 0x1dd   :  { %v974_v36 = vmax.f32 %v953_v52, %v954_v57  ;;  %v955_v6 = vmul.f32 %v939_v53, %v923_v59  ;;  %v956_v10 = vmul.f32 %v940_v44, %v924_v9  ;;  %v887_v11 = vadd.f32 %v871_v63, %v3156_v1 }
 0x1de   :  { %v868_v13 = vsel %vm863_vm5, %v857_v28, %v858_v2  ;;  %v869_v14 = vsel %vm863_vm5, %v856_v3, %v857_v28  ;;  %v870_v8 = vsel %vm863_vm5, %v855_v55, %v856_v3  ;;  %v970_v55 = vrot.slane %v969_v34, 2 }
 0x1df   :  { %v975_v15 = vrot.slane %v974_v36, 4  ;;  %v981_v17 = vmax.f32 %v955_v6, %v956_v10  ;;  %v890_v19 = vadd.f32 %v868_v13, %v3174_v49  ;;  %v910_v21 = vadd.f32 %v3232_v60, %v887_v11  ;;  %v946_v10 = vld [vmem:[#allocation2 + $0x58] sm:$0xff] }
 0x1e0   :  { %v888_v7 = vadd.f32 %v870_v8, %v3158_v12  ;;  %v889_v1 = vadd.f32 %v869_v14, %v3172_v32  ;;  %v2362_v26 = vpop.f32.mrb[44].mxu0  ;;  %v957_v49 = vmul.f32 %v941_v20, %v925_v16  ;;  %v971_v11 = vmax.f32 %v969_v34, %v970_v55 }
 0x1e1   :  { %v976_v22 = vmax.f32 %v974_v36, %v975_v15  ;;  %v982_v23 = vrot.slane %v981_v17, 4  ;;  %v683_v25 = vpop.f32.mrb[45].mxu0  ;;  %v926_v27 = vmax.f32 %v910_v21, 0.0  ;;  %v913_v40 = vadd.f32 %v3232_v60, %v890_v19  ;;  %v945_v36 = vld [vmem:[#allocation2 + $0x50] sm:$0xff] }
 0x1e2   :  { %v911_v29 = vadd.f32 %v3232_v60, %v888_v7  ;;  %v912_v31 = vadd.f32 %v3232_v60, %v889_v1  ;;  %v2363_v33 = vpop.f32.mrb[46].mxu0  ;;  %v859_v32 = vrot.slane %v683_v25, 4  ;;  %v861_v37 = vrot.slane %v2362_v26, 4  ;;  %v949_v26 = vld [vmem:[#allocation2 + $0x70] sm:$0xff] }
 0x1e3   :  { %v686_v62 = vpop.f32.mrb[47].mxu0  ;;  %v958_v41 = vmul.f32 %v942_v24, %v926_v27  ;;  %v977_v47 = vrot.slane %v976_v22, 2  ;;  %v983_v43 = vmax.f32 %v981_v17, %v982_v23  ;;  %v862_v59 = vrot.slane %v2363_v33, 4 }
 0x1e4   :  { %v927_v12 = vmax.f32 %v911_v29, 0.0  ;;  %v928_v45 = vmax.f32 %v912_v31, 0.0  ;;  %v867_v44 = vsel %vm863_vm5, %v858_v2, %v859_v32  ;;  %v860_v9 = vrot.slane %v686_v62, 4 }
 0x1e5   :  { %v988_v50 = vmax.f32 %v957_v49, %v958_v41  ;;  %v891_v46 = vadd.f32 %v867_v44, %v3188_v5  ;;  %v978_v61 = vmax.f32 %v976_v22, %v977_v47  ;;  %v984_v28 = vrot.slane %v983_v43, 2 }
 0x1e6   :  { %v959_v52 = vmul.f32 %v943_v39, %v927_v12  ;;  %v960_v53 = vmul.f32 %v944_v35, %v928_v45  ;;  %v929_v63 = vmax.f32 %v913_v40, 0.0  ;;  %v864_v2 = vsel %vm863_vm5, %v861_v37, %v862_v59  ;;  %v947_v12 = vld [vmem:[#allocation2 + $0x60] sm:$0xff] }
 0x1e7   :  { %v989_v57 = vrot.slane %v988_v50, 4  ;;  %v914_v3 = vadd.f32 %v3232_v60, %v891_v46  ;;  %v879_v5 = vsel %vm863_vm5, %v862_v59, %v847_v56  ;;  %v894_v14 = vadd.f32 %v864_v2, %v3221_v51 }
 0x1e8   :  { %v995_v58 = vmax.f32 %v959_v52, %v960_v53  ;;  %v895_v16 = vadd.f32 %v879_v5, %v3223_v54  ;;  %v865_v17 = vsel %vm863_vm5, %v860_v9, %v861_v37  ;;  %v979_v19 = vrot.slane %v978_v61, 1  ;;  %v950_v54 = vld [vmem:[#allocation2 + $0x78] sm:$0xff] }
 0x1e9   :  { %v990_v4 = vmax.f32 %v988_v50, %v989_v57  ;;  %v930_v13 = vmax.f32 %v914_v3, 0.0  ;;  %v961_v20 = vmul.f32 %v945_v36, %v929_v63  ;;  %v917_v7 = vadd.f32 %v3232_v60, %v894_v14 }
 0x1ea   :  { %v996_v6 = vrot.slane %v995_v58, 4  ;;  %v985_v42 = vmax.f32 %v983_v43, %v984_v28  ;;  %v918_v56 = vadd.f32 %v3232_v60, %v895_v16  ;;  %v866_v51 = vsel %vm863_vm5, %v859_v32, %v860_v9 }
 0x1eb   :  { %v991_v8 = vrot.slane %v990_v4, 2  ;;  %v962_v21 = vmul.f32 %v946_v10, %v930_v13  ;;  %v933_v24 = vmax.f32 %v917_v7, 0.0  ;;  %v892_v25 = vadd.f32 %v866_v51, %v3190_v18  ;;  %v948_v18 = vld [vmem:[#allocation2 + $0x68] sm:$0xff] }
 0x1ec   :  { %v997_v15 = vmax.f32 %v995_v58, %v996_v6  ;;  %v934_v27 = vmax.f32 %v918_v56, 0.0  ;;  %v893_v29 = vadd.f32 %v865_v17, %v3216_v48  ;;  %v972_v31 = vrot.slane %v971_v11, 1 }
 0x1ed   :  { %v992_v22 = vmax.f32 %v990_v4, %v991_v8  ;;  %v1002_v23 = vmax.f32 %v961_v20, %v962_v21  ;;  %v965_v34 = vmul.f32 %v949_v26, %v933_v24  ;;  %v915_v49 = vadd.f32 %v3232_v60, %v892_v25 }
 0x1ee   :  { %v998_v1 = vrot.slane %v997_v15, 2  ;;  %v986_v39 = vrot.slane %v985_v42, 1  ;;  %v966_v62 = vmul.f32 %v950_v54, %v934_v27  ;;  %v916_v41 = vadd.f32 %v3232_v60, %v893_v29 }
 0x1ef   :  { %v1003_v33 = vrot.slane %v1002_v23, 4  ;;  %v3299_v45 = vmax.f32 %v978_v61, %v979_v19  ;;  %v993_v32 = vrot.slane %v992_v22, 1  ;;  %v931_v43 = vmax.f32 %v915_v49, 0.0  ;;  %v2493_v49 = vld [vmem:[#allocation8 + $0x38] sm:$0xff]  }
 0x1f0   :  { %v999_v35 = vmax.f32 %v997_v15, %v998_v1  ;;  %v1016_v40 = vmax.f32 %v965_v34, %v966_v62  ;;  %v932_v50 = vmax.f32 %v916_v41, 0.0  ;;  %v3301_v48 = vmax.f32 %v971_v11, %v972_v31  ;;  %2399 = vmatpush3.bf16.msra.mxu0 %v2493_v49 }
 0x1f1   :  { %v1004_v47 = vmax.f32 %v1002_v23, %v1003_v33  ;;  %v963_v53 = vmul.f32 %v947_v12, %v931_v43  ;;  %v3303_v44 = vmax.f32 %v985_v42, %v986_v39  ;;  %v1024_v60 = vpack.c.bf16 %v3299_v45, %v3299_v45  ;;  %v2215_v39 = vld [vmem:[%s3615_s5] ss:$0 sm:$0xff] }
 0x1f2   :  { %v1000_v55 = vrot.slane %v999_v35, 1  ;;  %v1017_v37 = vrot.slane %v1016_v40, 4  ;;  %v964_v46 = vmul.f32 %v948_v18, %v932_v50  ;;  %v3307_v57 = vmax.f32 %v992_v22, %v993_v32  ;;  %v2224_v43 = vld [vmem:[%s3617_s7] ss:$0 sm:$0xff] }
 0x1f3   :  { %v1005_v52 = vrot.slane %v1004_v47, 2  ;;  %v1023_v61 = vpack.c.bf16 %v3301_v48, %v3301_v48  ;;  %v1025_v63 = vpack.c.bf16 %v3303_v44, %v3303_v44  ;;  %v1063_v6 = vunpack.c.l.b16 %v1024_v60 }
 0x1f4   :  { %v1018_v59 = vmax.f32 %v1016_v40, %v1017_v37  ;;  %v1009_v9 = vmax.f32 %v963_v53, %v964_v46  ;;  %v3313_v3 = vmax.f32 %v999_v35, %v1000_v55  ;;  %v1026_v10 = vpack.c.bf16 %v3307_v57, %v3307_v57 }
 0x1f5   :  { %v1006_v58 = vmax.f32 %v1004_v47, %v1005_v52  ;;  %v1062_v13 = vunpack.c.l.b16 %v1023_v61  ;;  %v1064_v14 = vunpack.c.l.b16 %v1025_v63 }
 0x1f6   :  { %v1019_v4 = vrot.slane %v1018_v59, 2  ;;  %v1010_v36 = vrot.slane %v1009_v9, 4  ;;  %v1027_v8 = vpack.c.bf16 %v3313_v3, %v3313_v3  ;;  %v1065_v17 = vunpack.c.l.b16 %v1026_v10 }
 0x1f7   :  { %v1007_v28 = vrot.slane %v1006_v58, 1  ;;  %v1071_v20 = vsel %vm1070_vm6, %v1063_v6, %v1062_v13 }
 0x1f8   :  { %v1020_v5 = vmax.f32 %v1018_v59, %v1019_v4  ;;  %v1011_v11 = vmax.f32 %v1009_v9, %v1010_v36  ;;  %v1066_v1 = vunpack.c.l.b16 %v1027_v8  ;;  %v1073_v56 = vsel %vm1072_vm7, %v1064_v14, %v1071_v20 }
 0x1f9   :  { %v3317_v2 = vmax.f32 %v1006_v58, %v1007_v28  ;;  %v1075_v51 = vsel %vm1074_vm8, %v1065_v17, %v1073_v56 }
 0x1fa   :  { %v1021_v15 = vrot.slane %v1020_v5, 1  ;;  %v1012_v16 = vrot.slane %v1011_v11, 2  ;;  %v1077_v54 = vsel %vm1076_vm9, %v1066_v1, %v1075_v51 }
 0x1fb   :  { %v1028_v19 = vpack.c.bf16 %v3317_v2, %v3317_v2 }
 0x1fc   :  { %v1013_v21 = vmax.f32 %v1011_v11, %v1012_v16  ;;  %v3324_v7 = vmax.f32 %v1020_v5, %v1021_v15 }
 0x1fd   :  { %v1067_v26 = vunpack.c.l.b16 %v1028_v19 }
 0x1fe   :  { %v1014_v42 = vrot.slane %v1013_v21, 1  ;;  %v1030_v23 = vpack.c.bf16 %v3324_v7, %v3324_v7 }
 0x1ff   :  { %v1079_v25 = vsel %vm1078_vm10, %v1067_v26, %v1077_v54 }
 0x200   :  { %v3328_v22 = vmax.f32 %v1013_v21, %v1014_v42  ;;  %v1069_v29 = vunpack.c.l.b16 %v1030_v23 }
 0x202   :  { %v1029_v24 = vpack.c.bf16 %v3328_v22, %v3328_v22 }
 0x204   :  { %v1068_v27 = vunpack.c.l.b16 %v1029_v24 }
 0x206   :  { %v1081_v31 = vsel %vm1080_vm11, %v1068_v27, %v1079_v25 }
 0x207   :  { %v1083_v33 = vsel %vm1082_vm12, %v1069_v29, %v1081_v31 }
 0x208   :  { %v1084_v34 = vpack.c.b16 %v1083_v33, %v1083_v33 }
 0x20a   :  { %2381 = vmatmul.mubr.bf16.vlgmr.msra.gmra.mrb[32].mxu1 %v1084_v34 }
 0x20b   :  { %1631 = vmatprep.mubr.bf16.mxu1 %v2770_v0 }
 0x2dd   :  { %v1168_v35 = vpop.f32.mrb[32].mxu1 }
 0x2de   :  { %v1169_v62 = vadd.f32 %v2215_v39, %v1168_v35  ;;  %v2382_v41 = vpop.f32.mrb[33].mxu1 }
 0x2df   :  { %v1171_v12 = vpop.f32.mrb[34].mxu1 }
 0x2e0   :  { %v1174_v32 = vpack.c.bf16 %v1169_v62, %v1169_v62  ;;  %v2383_v47 = vpop.f32.mrb[35].mxu1 }
 0x2e2   :  { %2401 = vmatmul.mubr.bf16.vlgmr.msra.gmra.mrb[48].mxu0 %v1174_v32 }
 0x3b5   :  { %v1280_v18 = vpop.f32.mrb[48].mxu0 }
 0x3b6   :  { %v1281_v40 = vadd.f32 %v2224_v43, %v1280_v18  ;;  %v2402_v0 = vpop.f32.mrb[49].mxu0 }
 0x3b7   :  { %v1283_v50 = vpop.f32.mrb[50].mxu0 }
 0x3b8   :  { %v2403_v52 = vpop.f32.mrb[51].mxu0  ;;  %v1287_v53 = vrot.slane %v1281_v40, 1  ;;  %v1288_v55 = vrot.slane %v1281_v40, 2  ;;  %v1289_v37 = vrot.slane %v1281_v40, 3  ;;  %v1290_v46 = vrot.slane %v1281_v40, 4 }
 0x3b9   :  { %v1291_v60 = vrot.slane %v1281_v40, 5  ;;  %v1292_v58 = vrot.slane %v1281_v40, 6  ;;  %v1293_v59 = vrot.slane %v1281_v40, 7  ;;  %v1302_v4 = vadd.f32 %v1281_v40, %v3301_v48 }
 0x3ba   :  { %v1303_v9 = vadd.f32 %v1287_v53, %v3299_v45  ;;  %v1304_v61 = vadd.f32 %v1288_v55, %v3303_v44  ;;  %v1305_v28 = vadd.f32 %v1289_v37, %v3307_v57  ;;  %v1306_v63 = vadd.f32 %v1290_v46, %v3313_v3 }
 0x3bb   :  { %v1307_v36 = vadd.f32 %v1291_v60, %v3317_v2  ;;  %v1308_v5 = vadd.f32 %v1292_v58, %v3328_v22  ;;  %v1309_v11 = vadd.f32 %v1293_v59, %v3324_v7 }
 0x3bc   :  { %v1320_v6 = vrot.slane %v1303_v9, 7  ;;  %v1322_v10 = vrot.slane %v1304_v61, 6  ;;  %v1324_v14 = vrot.slane %v1305_v28, 5  ;;  %v1326_v15 = vrot.slane %v1306_v63, 4 }
 0x3bd   :  { %v1328_v17 = vrot.slane %v1307_v36, 3  ;;  %v1330_v20 = vrot.slane %v1308_v5, 2  ;;  %v1332_v42 = vrot.slane %v1309_v11, 1 }
 0x3be   :  { %v1321_v13 = vsel %vm1070_vm6, %v1320_v6, %v1302_v4 }
 0x3bf   :  { %v1323_v8 = vsel %vm1072_vm7, %v1322_v10, %v1321_v13  ;;  %v2494_v10 = vld [vmem:[%s3620_s10] ss:$8 sps:$4 sm:$0xff]   ;;  %v2497_v13 = vld [vmem:[%s3620_s10 + $0x10] ss:$8 sps:$4 sm:$0xff]  }
 0x3c0   :  { %v1325_v16 = vsel %vm1074_vm8, %v1324_v14, %v1323_v8  ;;  %v2502_v14 = vld [vmem:[%s3620_s10 + $0x24] ss:$8 sps:$4 sm:$0xff]   ;;  %v2500_v8 = vld [vmem:[%s3620_s10 + $0x20] ss:$8 sps:$4 sm:$0xff]  }
 0x3c1   :  { %v1327_v19 = vsel %vm1076_vm9, %v1326_v15, %v1325_v16  ;;  %v2505_v15 = vld [vmem:[%s3620_s10 + $0x34] ss:$8 sps:$4 sm:$0xff]   ;;  %v2503_v16 = vld [vmem:[%s3620_s10 + $0x30] ss:$8 sps:$4 sm:$0xff]  }
 0x3c2   :  { %v1329_v21 = vsel %vm1078_vm10, %v1328_v17, %v1327_v19  ;;  %v2508_v17 = vld [vmem:[%s3620_s10 + $0x44] ss:$8 sps:$4 sm:$0xff]   ;;  %v2506_v19 = vld [vmem:[%s3620_s10 + $0x40] ss:$8 sps:$4 sm:$0xff]  }
 0x3c3   :  { %v1331_v1 = vsel %vm1080_vm11, %v1330_v20, %v1329_v21  ;;  %v2511_v20 = vld [vmem:[%s3620_s10 + $0x54] ss:$8 sps:$4 sm:$0xff]   ;;  %v2509_v21 = vld [vmem:[%s3620_s10 + $0x50] ss:$8 sps:$4 sm:$0xff]  }
 0x3c4   :  { %v1333_v56 = vsel %vm1082_vm12, %v1332_v42, %v1331_v1  ;;  %v2514_v42 = vld [vmem:[%s3620_s10 + $0x64] ss:$8 sps:$4 sm:$0xff]   ;;  %v2512_v1 = vld [vmem:[%s3620_s10 + $0x60] ss:$8 sps:$4 sm:$0xff]  }
 0x3c5   :  { %1335 = vadd.xlane.f32.xlu0 %v1333_v56  ;;  %v2517_v56 = vld [vmem:[%s3620_s10 + $0x74] ss:$8 sps:$4 sm:$0xff]  }
 0x452   :  { %v1336_v26 = vpop.xlane.xlu0 %1335 }
 0x453   :  { %v1338_v51 = vmul.f32 0.0078125, %v1336_v26  ;;  %v2515_v26 = vld [vmem:[%s3620_s10 + $0x70] ss:$8 sps:$4 sm:$0xff]  }
 0x455   :  { %v1340_v23 = vrot.slane %v1338_v51, 1  ;;  %v1341_v24 = vrot.slane %v1338_v51, 2  ;;  %v1342_v54 = vrot.slane %v1338_v51, 3  ;;  %v1343_v25 = vrot.slane %v1338_v51, 4 }
 0x456   :  { %v1344_v27 = vrot.slane %v1338_v51, 5  ;;  %v1345_v29 = vrot.slane %v1338_v51, 6  ;;  %v1346_v31 = vrot.slane %v1338_v51, 7  ;;  %v3360_v33 = vsub.f32 %v1302_v4, %v1338_v51  ;;  %v2518_v51 = vld [vmem:[#allocation13 + $0x40] sm:$0xff]  }
 0x457   :  { %v3362_v34 = vsub.f32 %v1303_v9, %v1340_v23  ;;  %v3364_v49 = vsub.f32 %v1304_v61, %v1341_v24  ;;  %v3366_v39 = vsub.f32 %v1305_v28, %v1342_v54  ;;  %v3368_v35 = vsub.f32 %v1306_v63, %v1343_v25  ;;  %v2519_v23 = vld [vmem:[#allocation13] sm:$0xff]   ;;  %v2520_v24 = vld [vmem:[#allocation13 + $0x48] sm:$0xff]   ;;  %2309 = vmatprep.subr.bf16.mxu0 %v2518_v51  ;;  %v2522_v25 = vld [vmem:[#allocation13 + $0x50] sm:$0xff]  }
 0x458   :  { %v3370_v62 = vsub.f32 %v1307_v36, %v1344_v27  ;;  %v3372_v41 = vsub.f32 %v1308_v5, %v1345_v29  ;;  %v3374_v12 = vsub.f32 %v1309_v11, %v1346_v31  ;;  %v1363_v40 = vmul.f32 %v3360_v33, %v3360_v33  ;;  %v2496_v5 = vld [vmem:[%s3620_s10 + $0x4] ss:$8 sps:$4 sm:$0xff]   ;;  %v2499_v11 = vld [vmem:[%s3620_s10 + $0x14] ss:$8 sps:$4 sm:$0xff]   ;;  %2310 = vmatpush3.bf16.msra.mxu0 %v2519_v23 }
 0x459   :  { %v1364_v32 = vmul.f32 %v3362_v34, %v3362_v34  ;;  %v1365_v47 = vmul.f32 %v3364_v49, %v3364_v49  ;;  %v1366_v43 = vmul.f32 %v3366_v39, %v3366_v39  ;;  %v1367_v18 = vmul.f32 %v3368_v35, %v3368_v35  ;;  %1599 = vmatprep.subr.bf16.mxu1 %v2496_v5  ;;  %v2521_v54 = vld [vmem:[#allocation13 + $0x8] sm:$0xff]   ;;  %v2523_v27 = vld [vmem:[#allocation13 + $0x10] sm:$0xff]   ;;  %v2524_v29 = vld [vmem:[#allocation13 + $0x58] sm:$0xff]  }
 0x45a   :  { %v1368_v0 = vmul.f32 %v3370_v62, %v3370_v62  ;;  %v1369_v53 = vmul.f32 %v3372_v41, %v3372_v41  ;;  %v1370_v55 = vmul.f32 %v3374_v12, %v3374_v12  ;;  %1600 = vmatpush1.bf16.msra.mxu1 %v2494_v10  ;;  %2311 = vmatprep.subr.bf16.mxu0 %v2520_v24  ;;  %v2525_v31 = vld [vmem:[#allocation13 + $0x18] sm:$0xff]  }
 0x45b   :  { %v1379_v50 = vrot.slane %v1364_v32, 7  ;;  %v1381_v52 = vrot.slane %v1365_v47, 6  ;;  %v1383_v46 = vrot.slane %v1366_v43, 5  ;;  %v1385_v58 = vrot.slane %v1367_v18, 4  ;;  %1601 = vmatprep.subr.bf16.mxu1 %v2499_v11  ;;  %v2526_v32 = vld [vmem:[#allocation13 + $0x60] sm:$0xff]   ;;  %v2528_v43 = vld [vmem:[#allocation13 + $0x68] sm:$0xff]  }
 0x45c   :  { %v1387_v9 = vrot.slane %v1368_v0, 3  ;;  %v1389_v28 = vrot.slane %v1369_v53, 2  ;;  %v1391_v4 = vrot.slane %v1370_v55, 1  ;;  %2312 = vmatpush3.bf16.msra.mxu0 %v2521_v54  ;;  %v2527_v47 = vld [vmem:[#allocation13 + $0x20] sm:$0xff]   ;;  %v2529_v18 = vld [vmem:[#allocation13 + $0x28] sm:$0xff]  }
 0x45d   :  { %v1380_v37 = vsel %vm1070_vm6, %v1379_v50, %v1363_v40  ;;  %2313 = vmatprep.subr.bf16.mxu0 %v2522_v25  ;;  %v2233_v53 = vld [vmem:[#allocation10] ss:$0 sm:$0xff] }
 0x45e   :  { %v1382_v60 = vsel %vm1072_vm7, %v1381_v52, %v1380_v37  ;;  %1602 = vmatpush1.bf16.msra.mxu1 %v2497_v13 }
 0x45f   :  { %v1384_v59 = vsel %vm1074_vm8, %v1383_v46, %v1382_v60  ;;  %1603 = vmatprep.subr.bf16.mxu1 %v2502_v14 }
 0x460   :  { %v1386_v61 = vsel %vm1076_vm9, %v1385_v58, %v1384_v59  ;;  %2314 = vmatpush3.bf16.msra.mxu0 %v2523_v27 }
 0x461   :  { %v1388_v63 = vsel %vm1078_vm10, %v1387_v9, %v1386_v61  ;;  %2315 = vmatprep.subr.bf16.mxu0 %v2524_v29 }
 0x462   :  { %v1390_v36 = vsel %vm1080_vm11, %v1389_v28, %v1388_v63  ;;  %1604 = vmatpush1.bf16.msra.mxu1 %v2500_v8  ;;  %v2234_v28 = vld [vmem:[#allocation11] ss:$0 sm:$0xff] }
 0x463   :  { %v1392_v6 = vsel %vm1082_vm12, %v1391_v4, %v1390_v36  ;;  %1605 = vmatprep.subr.bf16.mxu1 %v2505_v15 }
 0x464   :  { %1394 = vadd.xlane.f32.xlu0 %v1392_v6  ;;  %2316 = vmatpush3.bf16.msra.mxu0 %v2525_v31 }
 0x465   :  { %2317 = vmatprep.subr.bf16.mxu0 %v2526_v32 }
 0x466   :  { %1606 = vmatpush1.bf16.msra.mxu1 %v2503_v16 }
 0x467   :  { %1607 = vmatprep.subr.bf16.mxu1 %v2508_v17 }
 0x468   :  { %2318 = vmatpush3.bf16.msra.mxu0 %v2527_v47 }
 0x469   :  { %2319 = vmatprep.subr.bf16.mxu0 %v2528_v43 }
 0x46a   :  { %1608 = vmatpush1.bf16.msra.mxu1 %v2506_v19 }
 0x46b   :  { %1609 = vmatprep.subr.bf16.mxu1 %v2511_v20 }
 0x46c   :  { %2320 = vmatpush3.bf16.msra.mxu0 %v2529_v18 }
 0x46e   :  { %1610 = vmatpush1.bf16.msra.mxu1 %v2509_v21 }
 0x46f   :  { %1611 = vmatprep.subr.bf16.mxu1 %v2514_v42 }
 0x472   :  { %1612 = vmatpush1.bf16.msra.mxu1 %v2512_v1 }
 0x473   :  { %1613 = vmatprep.subr.bf16.mxu1 %v2517_v56 }
 0x476   :  { %1614 = vmatpush1.bf16.msra.mxu1 %v2515_v26 }
 0x477   :  { %2404 = vmatprep.subr.bf16.mxu1 %v2771_v30 }
 0x4f1   :  { %v1395_v40 = vpop.xlane.xlu0 %1394 }
 0x4f2   :  { %v1396_v0 = vmul.f32 0.0078125, %v1395_v40 }
 0x4f4   :  { %v1397_v50 = vadd.f32 1e-05, %v1396_v0 }
 0x4f6   :  { %2542 = vrsqrt.f32 %v1397_v50 }
 0x500   :  { %v2543_v52 = vpop.eup %2542 }
 0x501   :  { %v1400_v55 = vrot.slane %v2543_v52, 1  ;;  %v1401_v37 = vrot.slane %v2543_v52, 2  ;;  %v1402_v46 = vrot.slane %v2543_v52, 3  ;;  %v1403_v60 = vrot.slane %v2543_v52, 4 }
 0x502   :  { %v1404_v58 = vrot.slane %v2543_v52, 5  ;;  %v1405_v59 = vrot.slane %v2543_v52, 6  ;;  %v1406_v9 = vrot.slane %v2543_v52, 7  ;;  %v1415_v61 = vmul.f32 %v2543_v52, %v3360_v33 }
 0x503   :  { %v1416_v63 = vmul.f32 %v1400_v55, %v3362_v34  ;;  %v1417_v4 = vmul.f32 %v1401_v37, %v3364_v49  ;;  %v1418_v36 = vmul.f32 %v1402_v46, %v3366_v39  ;;  %v1419_v6 = vmul.f32 %v1403_v60, %v3368_v35 }
 0x504   :  { %v1420_v10 = vmul.f32 %v1404_v58, %v3370_v62  ;;  %v1421_v5 = vmul.f32 %v1405_v59, %v3372_v41  ;;  %v1422_v11 = vmul.f32 %v1406_v9, %v3374_v12  ;;  %v1429_v13 = vmul.f32 %v2233_v53, %v1415_v61 }
 0x505   :  { %v1430_v14 = vmul.f32 %v2233_v53, %v1416_v63  ;;  %v1431_v8 = vmul.f32 %v2233_v53, %v1417_v4  ;;  %v1432_v15 = vmul.f32 %v2233_v53, %v1418_v36  ;;  %v1433_v33 = vmul.f32 %v2233_v53, %v1419_v6  ;;  %v2530_v63 = vld [vmem:[#allocation13 + $0x70] sm:$0xff]   ;;  %v2532_v36 = vld [vmem:[#allocation13 + $0x78] sm:$0xff]  }
 0x506   :  { %v1434_v16 = vmul.f32 %v2233_v53, %v1420_v10  ;;  %v1435_v17 = vmul.f32 %v2233_v53, %v1421_v5  ;;  %v1436_v34 = vmul.f32 %v2233_v53, %v1422_v11  ;;  %v3456_v19 = vadd.f32 %v2234_v28, %v1429_v13  ;;  %v2531_v4 = vld [vmem:[#allocation13 + $0x30] sm:$0xff]   ;;  %2321 = vmatprep.subr.bf16.mxu0 %v2530_v63  ;;  %v2533_v6 = vld [vmem:[#allocation13 + $0x38] sm:$0xff]  }
 0x507   :  { %v3458_v49 = vadd.f32 %v2234_v28, %v1430_v14  ;;  %v3460_v39 = vadd.f32 %v2234_v28, %v1431_v8  ;;  %v3462_v35 = vadd.f32 %v2234_v28, %v1432_v15  ;;  %v3464_v62 = vadd.f32 %v2234_v28, %v1433_v33  ;;  %2322 = vmatpush3.bf16.msra.mxu0 %v2531_v4  ;;  %v1475_v5 = vld [vmem:[%s3621_s11] sm:$0x3] }
 0x508   :  { %v3466_v41 = vadd.f32 %v2234_v28, %v1434_v16  ;;  %v3468_v12 = vadd.f32 %v2234_v28, %v1435_v17  ;;  %v3470_v20 = vadd.f32 %v2234_v28, %v1436_v34  ;;  %v1451_v21 = vpack.c.bf16 %v3456_v19, %v3456_v19  ;;  %2323 = vmatprep.subr.bf16.mxu0 %v2532_v36 }
 0x509   :  { %v1452_v42 = vpack.c.bf16 %v3458_v49, %v3458_v49  ;;  %v1453_v1 = vpack.c.bf16 %v3460_v39, %v3460_v39  ;;  %v1454_v56 = vpack.c.bf16 %v3462_v35, %v3462_v35  ;;  %v1455_v26 = vpack.c.bf16 %v3464_v62, %v3464_v62 }
 0x50a   :  { %v1456_v51 = vpack.c.bf16 %v3466_v41, %v3466_v41  ;;  %v1457_v23 = vpack.c.bf16 %v3468_v12, %v3468_v12  ;;  %v1458_v24 = vpack.c.bf16 %v3470_v20, %v3470_v20  ;;  %v1495_v31 = vunpack.c.l.b16 %v1451_v21 }
 0x50b   :  { %v1496_v54 = vunpack.c.l.b16 %v1452_v42  ;;  %v1497_v25 = vunpack.c.l.b16 %v1453_v1  ;;  %v1498_v27 = vunpack.c.l.b16 %v1454_v56  ;;  %v1499_v29 = vunpack.c.l.b16 %v1455_v26  ;;  %2324 = vmatpush3.bf16.msra.mxu0 %v2533_v6 }
 0x50c   :  { %v1500_v32 = vunpack.c.l.b16 %v1456_v51  ;;  %v1501_v18 = vunpack.c.l.b16 %v1457_v23  ;;  %v1502_v40 = vunpack.c.l.b16 %v1458_v24  ;;  %v1479_v10 = vsub.s32 0, %v3060_v38  ;;  %v2251_v51 = vld [vmem:[%s3623_s13] ss:$0 sm:$0xff] }
 0x50d   :  { %v1503_v47 = vrot.slane %v1496_v54, 7  ;;  %v1505_v43 = vrot.slane %v1497_v25, 6  ;;  %v1507_v50 = vrot.slane %v1498_v27, 5  ;;  %v1509_v53 = vrot.slane %v1499_v29, 4 }
 0x50e   :  { %v1511_v37 = vrot.slane %v1500_v32, 3  ;;  %v1513_v60 = vrot.slane %v1501_v18, 2  ;;  %v1515_v59 = vrot.slane %v1502_v40, 1  ;;  %v1483_v11 = vsub.s32 1, %v3060_v38 }
 0x50f   :  { %v1504_v0 = vsel %vm1070_vm6, %v1503_v47, %v1495_v31  ;;  %v1480_v13 = vrot.slane %v1475_v5, %v1479_v10 }
 0x510   :  { %v1506_v52 = vsel %vm1072_vm7, %v1505_v43, %v1504_v0  ;;  %v1484_v14 = vrot.slane %v1475_v5, %v1483_v11 }
 0x511   :  { %v1508_v55 = vsel %vm1074_vm8, %v1507_v50, %v1506_v52 }
 0x512   :  { %v1510_v46 = vsel %vm1076_vm9, %v1509_v53, %v1508_v55 }
 0x513   :  { %v1512_v58 = vsel %vm1078_vm10, %v1511_v37, %v1510_v46 }
 0x514   :  { %v1514_v9 = vsel %vm1080_vm11, %v1513_v60, %v1512_v58 }
 0x515   :  { %v1516_v61 = vsel %vm1082_vm12, %v1515_v59, %v1514_v9 }
 0x516   :  { %v1517_v28 = vpack.c.b16 %v1516_v61, %v1516_v61 }
 0x518   :  { %1632 = vmatmul.mubr.bf16.vlgmr.msra.gmra.mrb[36].mxu1 %v1517_v28 }
 0x519   :  { %2420 = vmatprep.mubr.msk.bf16.mxu1 %vm2772_vm1, %v2771_v30 }
 0x5eb   :  { %v1633_v8 = vpop.f32.mrb[36].mxu1 }
 0x5ec   :  { %v1634_v15 = vadd.f32 %v1633_v8, %v1480_v13  ;;  %v1635_v33 = vpop.f32.mrb[37].mxu1 }
 0x5ed   :  { %v1636_v16 = vadd.f32 %v1635_v33, %v1484_v14  ;;  %v1637_v17 = vpop.f32.mrb[38].mxu1 }
 0x5ee   :  { %v1640_v34 = vmax.f32 %v1634_v15, 0.0  ;;  %v1638_v21 = vpop.f32.mrb[39].mxu1 }
 0x5ef   :  { %v1641_v42 = vmax.f32 %v1636_v16, 0.0 }
 0x5f0   :  { %v1642_v56 = vpack.c.bf16 %v1640_v34, %v1640_v34 }
 0x5f1   :  { %v1643_v1 = vpack.c.bf16 %v1641_v42, %v1641_v42 }
 0x5f3   :  { %1811 = vmatprep.mubr.bf16.mxu0 %v1643_v1 }
 0x5f4   :  { %1812 = vmatmul.mubr.bf16.vlgmr.msra.gmra.mrb[52].mxu0 %v1642_v56 }
 0x6c7   :  { %v2325_v26 = vpop.f32.mrb[52].mxu0 }
 0x6c8   :  { %v2326_v38 = vpop.f32.mrb[53].mxu0 }
 0x6c9   :  { %v2327_v23 = vadd.f32 %v2326_v38, %v2325_v26  ;;  %v2328_v24 = vpop.f32.mrb[54].mxu0 }
 0x6ca   :  { %v2329_v54 = vpop.f32.mrb[55].mxu0 }
 0x6cb   :  { %v1814_v25 = vadd.f32 %v2327_v23, %v2251_v51 }
 0x6cd   :  { %v1820_v27 = vrot.slane %v1814_v25, 1  ;;  %v1821_v29 = vrot.slane %v1814_v25, 2  ;;  %v1822_v31 = vrot.slane %v1814_v25, 3  ;;  %v1823_v32 = vrot.slane %v1814_v25, 4 }
 0x6ce   :  { %v1824_v47 = vrot.slane %v1814_v25, 5  ;;  %v1825_v43 = vrot.slane %v1814_v25, 6  ;;  %v1826_v18 = vrot.slane %v1814_v25, 7  ;;  %v1835_v53 = vadd.f32 %v1814_v25, %v3456_v19 }
 0x6cf   :  { %v1836_v40 = vadd.f32 %v1820_v27, %v3458_v49  ;;  %v1837_v0 = vadd.f32 %v1821_v29, %v3460_v39  ;;  %v1838_v50 = vadd.f32 %v1822_v31, %v3462_v35  ;;  %v1839_v52 = vadd.f32 %v1823_v32, %v3464_v62 }
 0x6d0   :  { %v1840_v55 = vadd.f32 %v1824_v47, %v3466_v41  ;;  %v1841_v60 = vadd.f32 %v1825_v43, %v3468_v12  ;;  %v1842_v58 = vadd.f32 %v1826_v18, %v3470_v20 }
 0x6d1   :  { %v1853_v37 = vrot.slane %v1836_v40, 7  ;;  %v1855_v46 = vrot.slane %v1837_v0, 6  ;;  %v1857_v9 = vrot.slane %v1838_v50, 5  ;;  %v1859_v39 = vrot.slane %v1839_v52, 4 }
 0x6d2   :  { %v1861_v61 = vrot.slane %v1840_v55, 3  ;;  %v1863_v19 = vrot.slane %v1841_v60, 2  ;;  %v1865_v28 = vrot.slane %v1842_v58, 1 }
 0x6d3   :  { %v1854_v59 = vsel %vm1070_vm6, %v1853_v37, %v1835_v53  ;;  %v2534_v37 = vld [vmem:[#allocation14] sm:$0xff]  }
 0x6d4   :  { %v1856_v49 = vsel %vm1072_vm7, %v1855_v46, %v1854_v59  ;;  %2405 = vmatpush3.bf16.msra.mxu1 %v2534_v37  ;;  %v2535_v46 = vld [vmem:[#allocation14 + $0x8] sm:$0xff]   ;;  %v2538_v59 = vld [vmem:[#allocation14 + $0x20] sm:$0xff]  }
 0x6d5   :  { %v1858_v35 = vsel %vm1074_vm8, %v1857_v9, %v1856_v49  ;;  %2406 = vmatprep.subr.bf16.mxu1 %v2771_v30  ;;  %v2539_v9 = vld [vmem:[#allocation14 + $0x28] sm:$0xff]   ;;  %v2540_v49 = vld [vmem:[#allocation14 + $0x30] sm:$0xff]  }
 0x6d6   :  { %v1860_v62 = vsel %vm1076_vm9, %v1859_v39, %v1858_v35  ;;  %v2541_v39 = vld [vmem:[#allocation14 + $0x38] sm:$0xff]  }
 0x6d7   :  { %v1862_v41 = vsel %vm1078_vm10, %v1861_v61, %v1860_v62 }
 0x6d8   :  { %v1864_v63 = vsel %vm1080_vm11, %v1863_v19, %v1862_v41  ;;  %2407 = vmatpush3.bf16.msra.mxu1 %v2535_v46  ;;  %v2268_v41 = vld [vmem:[%s3624_s14] ss:$0 sm:$0xff] }
 0x6d9   :  { %v1866_v12 = vsel %vm1082_vm12, %v1865_v28, %v1864_v63  ;;  %2408 = vmatprep.subr.bf16.mxu1 %v2771_v30 }
 0x6da   :  { %1868 = vadd.xlane.f32.xlu1 %v1866_v12 }
 0x767   :  { %v1869_v20 = vpop.xlane.xlu1 %1868 }
 0x768   :  { %v1870_v4 = vmul.f32 0.0078125, %v1869_v20 }
 0x76a   :  { %v1872_v36 = vrot.slane %v1870_v4, 1  ;;  %v1873_v6 = vrot.slane %v1870_v4, 2  ;;  %v1874_v10 = vrot.slane %v1870_v4, 3  ;;  %v1875_v5 = vrot.slane %v1870_v4, 4 }
 0x76b   :  { %v1876_v11 = vrot.slane %v1870_v4, 5  ;;  %v1877_v13 = vrot.slane %v1870_v4, 6  ;;  %v1878_v14 = vrot.slane %v1870_v4, 7  ;;  %v3520_v8 = vsub.f32 %v1835_v53, %v1870_v4 }
 0x76c   :  { %v3522_v15 = vsub.f32 %v1836_v40, %v1872_v36  ;;  %v3524_v33 = vsub.f32 %v1837_v0, %v1873_v6  ;;  %v3526_v16 = vsub.f32 %v1838_v50, %v1874_v10  ;;  %v3528_v17 = vsub.f32 %v1839_v52, %v1875_v5 }
 0x76d   :  { %v3530_v34 = vsub.f32 %v1840_v55, %v1876_v11  ;;  %v3532_v21 = vsub.f32 %v1841_v60, %v1877_v13  ;;  %v3534_v42 = vsub.f32 %v1842_v58, %v1878_v14  ;;  %v1895_v38 = vmul.f32 %v3520_v8, %v3520_v8  ;;  %v2536_v60 = vld [vmem:[#allocation14 + $0x10] sm:$0xff]   ;;  %v2537_v58 = vld [vmem:[#allocation14 + $0x18] sm:$0xff]  }
 0x76e   :  { %v1896_v1 = vmul.f32 %v3522_v15, %v3522_v15  ;;  %v1897_v56 = vmul.f32 %v3524_v33, %v3524_v33  ;;  %v1898_v26 = vmul.f32 %v3526_v16, %v3526_v16  ;;  %v1899_v51 = vmul.f32 %v3528_v17, %v3528_v17  ;;  %2409 = vmatpush3.bf16.msra.mxu1 %v2536_v60 }
 0x76f   :  { %v1900_v23 = vmul.f32 %v3530_v34, %v3530_v34  ;;  %v1901_v25 = vmul.f32 %v3532_v21, %v3532_v21  ;;  %v1902_v27 = vmul.f32 %v3534_v42, %v3534_v42  ;;  %2410 = vmatprep.subr.bf16.mxu1 %v2771_v30 }
 0x770   :  { %v1911_v24 = vrot.slane %v1896_v1, 7  ;;  %v1913_v54 = vrot.slane %v1897_v56, 6  ;;  %v1915_v31 = vrot.slane %v1898_v26, 5  ;;  %v1917_v47 = vrot.slane %v1899_v51, 4 }
 0x771   :  { %v1919_v18 = vrot.slane %v1900_v23, 3  ;;  %v1921_v0 = vrot.slane %v1901_v25, 2  ;;  %v1923_v52 = vrot.slane %v1902_v27, 1 }
 0x772   :  { %v1912_v29 = vsel %vm1070_vm6, %v1911_v24, %v1895_v38  ;;  %2411 = vmatpush3.bf16.msra.mxu1 %v2537_v58 }
 0x773   :  { %v1914_v32 = vsel %vm1072_vm7, %v1913_v54, %v1912_v29  ;;  %2412 = vmatprep.subr.bf16.mxu1 %v2771_v30 }
 0x774   :  { %v1916_v43 = vsel %vm1074_vm8, %v1915_v31, %v1914_v32 }
 0x775   :  { %v1918_v40 = vsel %vm1076_vm9, %v1917_v47, %v1916_v43 }
 0x776   :  { %v1920_v50 = vsel %vm1078_vm10, %v1919_v18, %v1918_v40  ;;  %2413 = vmatpush3.bf16.msra.mxu1 %v2538_v59 }
 0x777   :  { %v1922_v53 = vsel %vm1080_vm11, %v1921_v0, %v1920_v50  ;;  %2414 = vmatprep.subr.bf16.mxu1 %v2771_v30 }
 0x778   :  { %v1924_v55 = vsel %vm1082_vm12, %v1923_v52, %v1922_v53 }
 0x779   :  { %1926 = vadd.xlane.f32.xlu1 %v1924_v55 }
 0x77a   :  { %2415 = vmatpush3.bf16.msra.mxu1 %v2539_v9 }
 0x77b   :  { %2416 = vmatprep.subr.bf16.mxu1 %v2771_v30 }
 0x77e   :  { %2417 = vmatpush3.bf16.msra.mxu1 %v2540_v49 }
 0x77f   :  { %2418 = vmatprep.subr.bf16.mxu1 %v2771_v30  ;;  %v2269_v30 = vld [vmem:[%s3625_s15] ss:$0 sm:$0xff] }
 0x782   :  { %2419 = vmatpush3.bf16.msra.mxu1 %v2541_v39 }
 0x806   :  { %v1927_v35 = vpop.xlane.xlu1 %1926 }
 0x807   :  { %v1928_v61 = vmul.f32 0.0078125, %v1927_v35 }
 0x809   :  { %v1929_v62 = vadd.f32 1e-05, %v1928_v61 }
 0x80b   :  { %2544 = vrsqrt.f32 %v1929_v62 }
 0x815   :  { %v2545_v19 = vpop.eup %2544 }
 0x816   :  { %v1932_v28 = vrot.slane %v2545_v19, 1  ;;  %v1933_v63 = vrot.slane %v2545_v19, 2  ;;  %v1934_v12 = vrot.slane %v2545_v19, 3  ;;  %v1935_v20 = vrot.slane %v2545_v19, 4 }
 0x817   :  { %v1936_v4 = vrot.slane %v2545_v19, 5  ;;  %v1937_v36 = vrot.slane %v2545_v19, 6  ;;  %v1938_v6 = vrot.slane %v2545_v19, 7  ;;  %v1947_v10 = vmul.f32 %v2545_v19, %v3520_v8 }
 0x818   :  { %v1948_v5 = vmul.f32 %v1932_v28, %v3522_v15  ;;  %v1949_v11 = vmul.f32 %v1933_v63, %v3524_v33  ;;  %v1950_v13 = vmul.f32 %v1934_v12, %v3526_v16  ;;  %v1951_v14 = vmul.f32 %v1935_v20, %v3528_v17 }
 0x819   :  { %v1952_v1 = vmul.f32 %v1936_v4, %v3530_v34  ;;  %v1953_v56 = vmul.f32 %v1937_v36, %v3532_v21  ;;  %v1954_v26 = vmul.f32 %v1938_v6, %v3534_v42  ;;  %v1961_v51 = vmul.f32 %v2268_v41, %v1947_v10  ;;  %v2270_v10 = vld [vmem:[%s3641_s6] ss:$0 sm:$0xff] }
 0x81a   :  { %v1962_v8 = vmul.f32 %v2268_v41, %v1948_v5  ;;  %v1963_v38 = vmul.f32 %v2268_v41, %v1949_v11  ;;  %v1964_v23 = vmul.f32 %v2268_v41, %v1950_v13  ;;  %v1965_v24 = vmul.f32 %v2268_v41, %v1951_v14 }
 0x81b   :  { %v1966_v54 = vmul.f32 %v2268_v41, %v1952_v1  ;;  %v1967_v25 = vmul.f32 %v2268_v41, %v1953_v56  ;;  %v1968_v15 = vmul.f32 %v2268_v41, %v1954_v26  ;;  %v1975_v27 = vadd.f32 %v2269_v30, %v1961_v51 }
 0x81c   :  { %v1976_v33 = vadd.f32 %v2269_v30, %v1962_v8  ;;  %v1977_v29 = vadd.f32 %v2269_v30, %v1963_v38  ;;  %v1978_v16 = vadd.f32 %v2269_v30, %v1964_v23  ;;  %v1979_v31 = vadd.f32 %v2269_v30, %v1965_v24 }
 0x81d   :  { %v1980_v17 = vadd.f32 %v2269_v30, %v1966_v54  ;;  %v1981_v32 = vadd.f32 %v2269_v30, %v1967_v25  ;;  %v1982_v34 = vadd.f32 %v2269_v30, %v1968_v15  ;;  %v1983_v21 = vadd.f32 %v1975_v27, %v3301_v48 }
 0x81e   :  { %v1984_v42 = vadd.f32 %v1976_v33, %v3299_v45  ;;  %v1985_v47 = vadd.f32 %v1977_v29, %v3303_v44  ;;  %v1986_v43 = vadd.f32 %v1978_v16, %v3307_v57  ;;  %v1987_v18 = vadd.f32 %v1979_v31, %v3313_v3 }
 0x81f   :  { %v1988_v40 = vadd.f32 %v1980_v17, %v3317_v2  ;;  %v1989_v0 = vadd.f32 %v1981_v32, %v3328_v22  ;;  %v1990_v50 = vadd.f32 %v1982_v34, %v3324_v7  ;;  %v1991_v52 = vpack.c.bf16 %v1983_v21, %v1983_v21 }
 0x820   :  { %v1992_v53 = vpack.c.bf16 %v1984_v42, %v1984_v42  ;;  %v1993_v55 = vpack.c.bf16 %v1985_v47, %v1985_v47  ;;  %v1994_v37 = vpack.c.bf16 %v1986_v43, %v1986_v43  ;;  %v1995_v46 = vpack.c.bf16 %v1987_v18, %v1987_v18 }
 0x821   :  { %v1996_v48 = vpack.c.bf16 %v1988_v40, %v1988_v40  ;;  %v1997_v60 = vpack.c.bf16 %v1989_v0, %v1989_v0  ;;  %v1998_v45 = vpack.c.bf16 %v1990_v50, %v1990_v50  ;;  %v2030_v9 = vunpack.c.l.b16 %v1991_v52 }
 0x822   :  { %v2031_v58 = vunpack.c.l.b16 %v1992_v53  ;;  %v2032_v44 = vunpack.c.l.b16 %v1993_v55  ;;  %v2033_v59 = vunpack.c.l.b16 %v1994_v37  ;;  %v2034_v57 = vunpack.c.l.b16 %v1995_v46 }
 0x823   :  { %v2035_v3 = vunpack.c.l.b16 %v1996_v48  ;;  %v2036_v39 = vunpack.c.l.b16 %v1997_v60  ;;  %v2037_v22 = vunpack.c.l.b16 %v1998_v45 }
 0x824   :  { %v2038_v49 = vrot.slane %v2031_v58, 7  ;;  %v2040_v2 = vrot.slane %v2032_v44, 6  ;;  %v2042_v35 = vrot.slane %v2033_v59, 5  ;;  %v2044_v62 = vrot.slane %v2034_v57, 4 }
 0x825   :  { %v2046_v41 = vrot.slane %v2035_v3, 3  ;;  %v2048_v63 = vrot.slane %v2036_v39, 2  ;;  %v2050_v20 = vrot.slane %v2037_v22, 1 }
 0x826   :  { %v2039_v7 = vsel %vm1070_vm6, %v2038_v49, %v2030_v9 }
 0x827   :  { %v2041_v61 = vsel %vm1072_vm7, %v2040_v2, %v2039_v7 }
 0x828   :  { %v2043_v19 = vsel %vm1074_vm8, %v2042_v35, %v2041_v61 }
 0x829   :  { %v2045_v28 = vsel %vm1076_vm9, %v2044_v62, %v2043_v19 }
 0x82a   :  { %v2047_v12 = vsel %vm1078_vm10, %v2046_v41, %v2045_v28 }
 0x82b   :  { %v2049_v4 = vsel %vm1080_vm11, %v2048_v63, %v2047_v12 }
 0x82c   :  { %v2051_v36 = vsel %vm1082_vm12, %v2050_v20, %v2049_v4 }
 0x82d   :  { %v2052_v6 = vpack.c.b16 %v2051_v36, %v2051_v36 }
 0x82f   :  { %2421 = vmatmul.mubr.bf16.vlgmr.msra.gmra.mrb[40].mxu1 %v2052_v6 }
 0x902   :  { %v2136_v30 = vpop.f32.mrb[40].mxu1 }
 0x903   :  { %v2137_v5 = vadd.f32 %v2270_v10, %v2136_v30  ;;  %v2422_v11 = vpop.f32.mrb[41].mxu1 }
 0x904   :  { %v2139_v13 = vpop.f32.mrb[42].mxu1 }
 0x905   :  { %2142 = vst [vmem:[#allocation16] sm:$0xff] %v2137_v5  ;;  %v2423_v14 = vpop.f32.mrb[43].mxu1 }
 0x906   :  { %2733 = shalt.err (!%p2730_p12)
}
 0x907   :  { %s3642_s26 = sld [smem:[#allocation27_spill]] }
 0x90d   :  { %s2734_s27 = scalar_lea.hbm %s3642_s26, 128 }
 0x90e   :  { %p2735_p13 = scmp.ne.s32.totalorder %s3642_s26, %s2734_s27  ;;  %p2738_p0 = scmp.lt.u32.totalorder %s2734_s27, %s3642_s26 }
 0x910   :  { %p2740_p1 = pnand %p2738_p0, %p2735_p13 }
 0x912   :  { %2743 = shalt.err (!%p2740_p1)
}
 0x913   :  { %2152 = dma.vmem_to_hbm [thread:$0]  %s2150_s8, 128, %s3642_s26, [#allocation4]  }
 0x914   :  { %2754 = dma.done.wait [#allocation4], 128  }
 0x915   :  { %2755 = vsyncadd [#allocation4], 4294967168 }
 0x916   :  { %2156 = vsyncpa [#allocation3], 1 }
 0x917   :  { %2157 = vsyncpa [#allocation6], 1 }
 0x918   :  { %2158 = vsyncpa [#allocation9], 1 }
 0x919   :  { %2159 = vsyncpa [#allocation12], 1 }
 0x91a   :  { %2160 = vsyncpa [#allocation15], 1 }
 0x91b   :  { %2161 = vsyncpa [#allocation4], 1 }

</bundles_post_ra>
